<compile_context>
chip_gen: v7x
topology: tpu7x:2x2x1
jax: 0.10.0
libtpu: 0.0.40
codegen_flags: <defaults>
</compile_context>

<pallas_src>
import jax
import jax.numpy as jnp
from jax.experimental import pallas as pl
from jax.experimental.pallas import tpu as pltpu

INPUT_SIZE = 500
HIDDEN = 64
OUT_DIM = 2

# jnp.bfloat16 here enables bf16 MXU for the hoisted projection (f32 accumulate);
# kept f32 for exact parity with the f32 reference at 1e-4 tolerance.
PROJ_INPUT_DTYPE = jnp.float32


def _make_fused_lstm_kernel(t_total, t_chunk, num_chunks, b_pad):
    """Fused kernel: per time-chunk input projection (MXU) + serial recurrence."""
    H = HIDDEN
    mask_tail = (t_total % t_chunk) != 0

    def kernel(x_ref, wih_ref, bias_ref, whh_ref, wout_ref, bout_ref,
               out_ref, gates_sc, h_sc, c_sc):
        chunk = pl.program_id(0)

        @pl.when(chunk == 0)
        def _():
            h_sc[...] = jnp.zeros_like(h_sc)
            c_sc[...] = jnp.zeros_like(c_sc)

        # ---- (1) hoisted input projection for this chunk -------------------
        # x block is time-major rows (t, b): (T_CHUNK * B_pad, I_pad).
        # Gates live only in VMEM scratch; they never round-trip through HBM.
        gates_sc[...] = (
            jnp.dot(x_ref[...], wih_ref[...], preferred_element_type=jnp.float32)
            + bias_ref[...]
        )

        # Hoist loop-invariant loads out of the time loop.
        whh = whh_ref[...]            # (H, 4H), gate order [i, f, o, g]
        h0 = h_sc[...]
        c0 = c_sc[...]

        # ---- (2) serial recurrence over this chunk --------------------------
        def step(i, carry):
            h, c = carry
            row = pl.multiple_of(i * b_pad, b_pad)       # tile-aligned start
            g = gates_sc[pl.ds(row, b_pad), :] + jnp.dot(
                h, whh, preferred_element_type=jnp.float32)
            # sigmoid(z) = 0.5*tanh(0.5*z) + 0.5: one EUP op (tanh) instead of
            # exp + divide on the serial per-step chain.
            sig = 0.5 * jnp.tanh(0.5 * g[:, : 3 * H]) + 0.5
            g_g = jnp.tanh(g[:, 3 * H:])
            i_g = sig[:, 0 * H:1 * H]
            f_g = sig[:, 1 * H:2 * H]
            o_g = sig[:, 2 * H:3 * H]
            c_new = f_g * c + i_g * g_g
            h_new = o_g * jnp.tanh(c_new)
            if mask_tail:
                # Only traced when T % T_CHUNK != 0: padded steps must not
                # update the carry (zero gates are NOT an identity step).
                valid = (chunk * t_chunk + i) < t_total
                h_new = jnp.where(valid, h_new, h)
                c_new = jnp.where(valid, c_new, c)
            return (h_new, c_new)

        # Static trip count + partial unroll on every chunk.
        h_f, c_f = jax.lax.fori_loop(0, t_chunk, step, (h0, c0),
                                     unroll=min(8, t_chunk))
        h_sc[...] = h_f
        c_sc[...] = c_f

        # ---- (3) final Linear on the last hidden state ----------------------
        @pl.when(chunk == num_chunks - 1)
        def _():
            out_ref[...] = (
                jnp.dot(h_f, wout_ref[...], preferred_element_type=jnp.float32)
                + bout_ref[...]
            ).astype(out_ref.dtype)

    return kernel


def rnn_forward(x, params):
    """x: (B, T, INPUT_SIZE) float32.  Returns (B, 2) float32."""
    w_ih, w_hh, b_ih, b_hh, w_out, b_out = (
        params["w_ih"], params["w_hh"], params["b_ih"], params["b_hh"],
        params["w_out"], params["b_out"],
    )
    B, T, I = x.shape
    assert I == INPUT_SIZE
    H = HIDDEN
    G = 4 * H

    # ---- weight prep (once, outside the kernel) ----------------------------
    # Reorder PyTorch gate blocks [i, f, g, o] -> [i, f, o, g].
    perm = jnp.concatenate([
        jnp.arange(0 * H, 1 * H), jnp.arange(1 * H, 2 * H),
        jnp.arange(3 * H, 4 * H), jnp.arange(2 * H, 3 * H)])
    wih_t = jnp.transpose(w_ih, (1, 0))[:, perm]        # (I, 4H)
    whh_t = jnp.transpose(w_hh, (1, 0))[:, perm]        # (H, 4H)
    bias = (b_ih + b_hh)[perm].reshape(1, G)            # (1, 4H)
    wout_t = jnp.transpose(w_out, (1, 0))               # (H, 2)
    bout = b_out.reshape(1, OUT_DIM)                    # (1, 2)

    # Pad contraction dim 500 -> 512 (clean K tiling, lane-dense DMAs);
    # pad batch to a sublane multiple.
    I_pad = ((I + 127) // 128) * 128
    B_pad = ((B + 7) // 8) * 8
    wih_p = jnp.pad(wih_t, ((0, I_pad - I), (0, 0))).astype(PROJ_INPUT_DTYPE)

    # Time chunking: ~2 MiB of x slab per chunk (T_CHUNK*8*512*4 bytes),
    # double-buffered input + 1 MiB gates scratch stays well under the scoped
    # VMEM default on every generation (incl. v7x).
    T_CHUNK = max(1, min(T, 128))
    num_chunks = (T + T_CHUNK - 1) // T_CHUNK
    T_pad = num_chunks * T_CHUNK

    # Time-major rows (t, b) so per-step gates rows are contiguous & aligned.
    # This is the only HBM-level relayout left (the narrow gates tensor never
    # touches HBM anymore).
    x_tm = jnp.pad(jnp.transpose(x, (1, 0, 2)),
                   ((0, T_pad - T), (0, B_pad - B), (0, I_pad - I)))
    x2d = x_tm.reshape(T_pad * B_pad, I_pad).astype(PROJ_INPUT_DTYPE)

    kernel = _make_fused_lstm_kernel(T, T_CHUNK, num_chunks, B_pad)

    out = pl.pallas_call(
        kernel,
        out_shape=jax.ShapeDtypeStruct((B_pad, OUT_DIM), jnp.float32),
        grid_spec=pltpu.PrefetchScalarGridSpec(
            num_scalar_prefetch=0,
            grid=(num_chunks,),
            in_specs=[
                pl.BlockSpec((T_CHUNK * B_pad, I_pad), lambda c: (c, 0)),  # x slab
                pl.BlockSpec((I_pad, G), lambda c: (0, 0)),                # W_ih^T
                pl.BlockSpec((1, G), lambda c: (0, 0)),                    # b_ih+b_hh
                pl.BlockSpec((H, G), lambda c: (0, 0)),                    # W_hh^T
                pl.BlockSpec((H, OUT_DIM), lambda c: (0, 0)),              # W_out^T
                pl.BlockSpec((1, OUT_DIM), lambda c: (0, 0)),              # b_out
            ],
            out_specs=pl.BlockSpec((B_pad, OUT_DIM), lambda c: (0, 0)),
            scratch_shapes=[
                pltpu.VMEM((T_CHUNK * B_pad, G), jnp.float32),  # gates (VMEM only)
                pltpu.VMEM((B_pad, H), jnp.float32),            # h carry
                pltpu.VMEM((B_pad, H), jnp.float32),            # c carry
            ],
        ),
        compiler_params=pltpu.CompilerParams(
            dimension_semantics=("arbitrary",),   # true recurrence over time
        ),
    )(x2d, wih_p, bias, whh_t, wout_t, bout)

    return out[:B]


rnn_forward_jit = jax.jit(rnn_forward)


def init_params(key):
    """Deterministic init matching PyTorch shapes (uniform(-k, k), k=1/sqrt(H))."""
    k = 1.0 / jnp.sqrt(jnp.float32(HIDDEN))
    ks = jax.random.split(key, 6)
    u = lambda kk, shape: jax.random.uniform(kk, shape, jnp.float32, -k, k)
    return {
        "w_ih": u(ks[0], (4 * HIDDEN, INPUT_SIZE)),
        "w_hh": u(ks[1], (4 * HIDDEN, HIDDEN)),
        "b_ih": u(ks[2], (4 * HIDDEN,)),
        "b_hh": u(ks[3], (4 * HIDDEN,)),
        "w_out": u(ks[4], (OUT_DIM, HIDDEN)),
        "b_out": u(ks[5], (OUT_DIM,)),
    }


def rnn_reference(x, params):
    """Pure-JAX reference of the same forward pass (lax.scan LSTM, PyTorch gate order)."""
    w_ih, w_hh, b_ih, b_hh, w_out, b_out = (
        params["w_ih"], params["w_hh"], params["b_ih"], params["b_hh"],
        params["w_out"], params["b_out"],
    )
    B = x.shape[0]
    H = HIDDEN

    def step(carry, x_t):
        h, c = carry
        gates = x_t @ w_ih.T + h @ w_hh.T + b_ih + b_hh
        i_g = jax.nn.sigmoid(gates[:, 0 * H:1 * H])
        f_g = jax.nn.sigmoid(gates[:, 1 * H:2 * H])
        g_g = jnp.tanh(gates[:, 2 * H:3 * H])
        o_g = jax.nn.sigmoid(gates[:, 3 * H:4 * H])
        c = f_g * c + i_g * g_g
        h = o_g * jnp.tanh(c)
        return (h, c), None

    h0 = jnp.zeros((B, H), jnp.float32)
    c0 = jnp.zeros((B, H), jnp.float32)
    (h_T, _), _ = jax.lax.scan(step, (h0, c0), jnp.transpose(x, (1, 0, 2)))
    return h_T @ w_out.T + b_out


if __name__ == "__main__":
    key = jax.random.PRNGKey(0)
    k_x, k_p = jax.random.split(key)

    B, T = 2, 8
    x = jax.random.normal(k_x, (B, T, INPUT_SIZE), jnp.float32)
    params = init_params(k_p)

    out = jax.block_until_ready(rnn_forward_jit(x, params))
    ref = jax.block_until_ready(rnn_reference(x, params))

    assert out.shape == (B, OUT_DIM)
    assert jnp.allclose(out, ref, atol=1e-4, rtol=1e-4)
    print("KERNEL_OK")
</pallas_src>

<mosaic_0001>
module attributes {stable_mosaic.version = 11 : i64} {
  func.func @kernel(%arg0: i32, %arg1: memref<64x512xf32, #tpu.memory_space<vmem>>, %arg2: memref<512x256xf32, #tpu.memory_space<vmem>>, %arg3: memref<1x256xf32, #tpu.memory_space<vmem>>, %arg4: memref<64x256xf32, #tpu.memory_space<vmem>>, %arg5: memref<64x2xf32, #tpu.memory_space<vmem>>, %arg6: memref<1x2xf32, #tpu.memory_space<vmem>>, %arg7: memref<8x2xf32, #tpu.memory_space<vmem>>, %arg8: memref<64x256xf32, #tpu.memory_space<vmem>>, %arg9: memref<8x64xf32, #tpu.memory_space<vmem>>, %arg10: memref<8x64xf32, #tpu.memory_space<vmem>>) attributes {dimension_semantics = [#tpu.dimension_semantics<arbitrary>], iteration_bounds = array<i64: 1>, scalar_prefetch = 0 : i64, scratch_operands = 3 : i64, tpu.core_type = #tpu.core_type<tc>, window_params = [{transform_indices = @transform_0, window_bounds = array<i64: 64, 512>}, {pipeline_mode = #tpu.pipeline_mode<synchronous>, transform_indices = @transform_1, window_bounds = array<i64: 512, 256>}, {pipeline_mode = #tpu.pipeline_mode<synchronous>, transform_indices = @transform_2, window_bounds = array<i64: 1, 256>}, {pipeline_mode = #tpu.pipeline_mode<synchronous>, transform_indices = @transform_3, window_bounds = array<i64: 64, 256>}, {pipeline_mode = #tpu.pipeline_mode<synchronous>, transform_indices = @transform_4, window_bounds = array<i64: 64, 2>}, {pipeline_mode = #tpu.pipeline_mode<synchronous>, transform_indices = @transform_5, window_bounds = array<i64: 1, 2>}, {pipeline_mode = #tpu.pipeline_mode<synchronous>, transform_indices = @transform_6, window_bounds = array<i64: 8, 2>}]} {
    %c0_i32 = arith.constant 0 : i32
    %0 = arith.cmpi eq, %arg0, %c0_i32 : i32
    %1 = arith.extui %0 : i1 to i32
    %c0_i32_0 = arith.constant 0 : i32
    %2 = arith.cmpi ne, %1, %c0_i32_0 : i32
    scf.if %2 {
      %cst_69 = arith.constant 0.000000e+00 : f32
      %210 = vector.broadcast %cst_69 : f32 to vector<8x64xf32>
      %c0_70 = arith.constant 0 : index
      %c0_71 = arith.constant 0 : index
      %211 = vector.load %arg9[%c0_70, %c0_71] : memref<8x64xf32, #tpu.memory_space<vmem>>, vector<8x64xf32>
      tpu.vector_store %arg9[%c0_70, %c0_71], %210 {strides = array<i32>} : memref<8x64xf32, #tpu.memory_space<vmem>>, vector<8x64xf32>,
      %cst_72 = arith.constant 0.000000e+00 : f32
      %212 = vector.broadcast %cst_72 : f32 to vector<8x64xf32>
      %c0_73 = arith.constant 0 : index
      %c0_74 = arith.constant 0 : index
      %213 = vector.load %arg10[%c0_73, %c0_74] : memref<8x64xf32, #tpu.memory_space<vmem>>, vector<8x64xf32>
      tpu.vector_store %arg10[%c0_73, %c0_74], %212 {strides = array<i32>} : memref<8x64xf32, #tpu.memory_space<vmem>>, vector<8x64xf32>,
    } else {
    }
    %c0 = arith.constant 0 : index
    %c0_1 = arith.constant 0 : index
    %3 = vector.load %arg1[%c0, %c0_1] : memref<64x512xf32, #tpu.memory_space<vmem>>, vector<64x512xf32>
    %c0_2 = arith.constant 0 : index
    %c0_3 = arith.constant 0 : index
    %4 = vector.load %arg2[%c0_2, %c0_3] : memref<512x256xf32, #tpu.memory_space<vmem>>, vector<512x256xf32>
    %cst = arith.constant dense<0.000000e+00> : vector<64x256xf32>
    %5 = tpu.matmul %3, %4, %cst {dimension_numbers = #tpu.dot_dimension_numbers<[1], [0], [0], [1], [0, 0, 1, 1], [], []>} : vector<64x512xf32>, vector<512x256xf32>, vector<64x256xf32> -> vector<64x256xf32>
    %c0_4 = arith.constant 0 : index
    %c0_5 = arith.constant 0 : index
    %6 = vector.load %arg3[%c0_4, %c0_5] : memref<1x256xf32, #tpu.memory_space<vmem>>, vector<1x256xf32>
    %7 = vector.broadcast %6 : vector<1x256xf32> to vector<64x256xf32>
    %8 = arith.addf %5, %7 : vector<64x256xf32>
    %c0_6 = arith.constant 0 : index
    %c0_7 = arith.constant 0 : index
    %9 = vector.load %arg8[%c0_6, %c0_7] : memref<64x256xf32, #tpu.memory_space<vmem>>, vector<64x256xf32>
    tpu.vector_store %arg8[%c0_6, %c0_7], %8 {strides = array<i32>} : memref<64x256xf32, #tpu.memory_space<vmem>>, vector<64x256xf32>,
    %c0_8 = arith.constant 0 : index
    %c0_9 = arith.constant 0 : index
    %10 = vector.load %arg4[%c0_8, %c0_9] : memref<64x256xf32, #tpu.memory_space<vmem>>, vector<64x256xf32>
    %c0_10 = arith.constant 0 : index
    %c0_11 = arith.constant 0 : index
    %11 = vector.load %arg9[%c0_10, %c0_11] : memref<8x64xf32, #tpu.memory_space<vmem>>, vector<8x64xf32>
    %c0_12 = arith.constant 0 : index
    %c0_13 = arith.constant 0 : index
    %12 = vector.load %arg10[%c0_12, %c0_13] : memref<8x64xf32, #tpu.memory_space<vmem>>, vector<8x64xf32>
    %c0_i32_14 = arith.constant 0 : i32
    %c8_i32 = arith.constant 8 : i32
    %13 = arith.muli %c0_i32_14, %c8_i32 : i32
    %14 = tpu.assume_multiple %13, 8 : i32
    %15 = arith.index_cast %14 : i32 to index
    %c0_15 = arith.constant 0 : index
    %16 = vector.load %arg8[%15, %c0_15] : memref<64x256xf32, #tpu.memory_space<vmem>>, vector<8x256xf32>
    %cst_16 = arith.constant dense<0.000000e+00> : vector<8x256xf32>
    %17 = tpu.matmul %11, %10, %cst_16 {dimension_numbers = #tpu.dot_dimension_numbers<[1], [0], [0], [1], [0, 0, 1, 1], [], []>} : vector<8x64xf32>, vector<64x256xf32>, vector<8x256xf32> -> vector<8x256xf32>
    %18 = arith.addf %16, %17 : vector<8x256xf32>
    %19 = vector.extract_strided_slice %18 {offsets = [0, 0], sizes = [8, 192], strides = [1, 1]} : vector<8x256xf32> to vector<8x192xf32>
    %cst_17 = arith.constant 5.000000e-01 : f32
    %20 = vector.broadcast %cst_17 : f32 to vector<8x192xf32>
    %21 = arith.mulf %20, %19 : vector<8x192xf32>
    %22 = math.tanh %21 : vector<8x192xf32>
    %cst_18 = arith.constant 5.000000e-01 : f32
    %23 = vector.broadcast %cst_18 : f32 to vector<8x192xf32>
    %24 = arith.mulf %23, %22 : vector<8x192xf32>
    %cst_19 = arith.constant 5.000000e-01 : f32
    %25 = vector.broadcast %cst_19 : f32 to vector<8x192xf32>
    %26 = arith.addf %24, %25 : vector<8x192xf32>
    %27 = vector.extract_strided_slice %18 {offsets = [0, 192], sizes = [8, 64], strides = [1, 1]} : vector<8x256xf32> to vector<8x64xf32>
    %28 = math.tanh %27 : vector<8x64xf32>
    %29 = vector.extract_strided_slice %26 {offsets = [0, 0], sizes = [8, 64], strides = [1, 1]} : vector<8x192xf32> to vector<8x64xf32>
    %30 = vector.extract_strided_slice %26 {offsets = [0, 64], sizes = [8, 64], strides = [1, 1]} : vector<8x192xf32> to vector<8x64xf32>
    %31 = vector.extract_strided_slice %26 {offsets = [0, 128], sizes = [8, 64], strides = [1, 1]} : vector<8x192xf32> to vector<8x64xf32>
    %32 = arith.mulf %30, %12 : vector<8x64xf32>
    %33 = arith.mulf %29, %28 : vector<8x64xf32>
    %34 = arith.addf %32, %33 : vector<8x64xf32>
    %35 = math.tanh %34 : vector<8x64xf32>
    %36 = arith.mulf %31, %35 : vector<8x64xf32>
    %c1_i32 = arith.constant 1 : i32
    %c8_i32_20 = arith.constant 8 : i32
    %37 = arith.muli %c1_i32, %c8_i32_20 : i32
    %38 = tpu.assume_multiple %37, 8 : i32
    %39 = arith.index_cast %38 : i32 to index
    %c0_21 = arith.constant 0 : index
    %40 = vector.load %arg8[%39, %c0_21] : memref<64x256xf32, #tpu.memory_space<vmem>>, vector<8x256xf32>
    %cst_22 = arith.constant dense<0.000000e+00> : vector<8x256xf32>
    %41 = tpu.matmul %36, %10, %cst_22 {dimension_numbers = #tpu.dot_dimension_numbers<[1], [0], [0], [1], [0, 0, 1, 1], [], []>} : vector<8x64xf32>, vector<64x256xf32>, vector<8x256xf32> -> vector<8x256xf32>
    %42 = arith.addf %40, %41 : vector<8x256xf32>
    %43 = vector.extract_strided_slice %42 {offsets = [0, 0], sizes = [8, 192], strides = [1, 1]} : vector<8x256xf32> to vector<8x192xf32>
    %cst_23 = arith.constant 5.000000e-01 : f32
    %44 = vector.broadcast %cst_23 : f32 to vector<8x192xf32>
    %45 = arith.mulf %44, %43 : vector<8x192xf32>
    %46 = math.tanh %45 : vector<8x192xf32>
    %cst_24 = arith.constant 5.000000e-01 : f32
    %47 = vector.broadcast %cst_24 : f32 to vector<8x192xf32>
    %48 = arith.mulf %47, %46 : vector<8x192xf32>
    %cst_25 = arith.constant 5.000000e-01 : f32
    %49 = vector.broadcast %cst_25 : f32 to vector<8x192xf32>
    %50 = arith.addf %48, %49 : vector<8x192xf32>
    %51 = vector.extract_strided_slice %42 {offsets = [0, 192], sizes = [8, 64], strides = [1, 1]} : vector<8x256xf32> to vector<8x64xf32>
    %52 = math.tanh %51 : vector<8x64xf32>
    %53 = vector.extract_strided_slice %50 {offsets = [0, 0], sizes = [8, 64], strides = [1, 1]} : vector<8x192xf32> to vector<8x64xf32>
    %54 = vector.extract_strided_slice %50 {offsets = [0, 64], sizes = [8, 64], strides = [1, 1]} : vector<8x192xf32> to vector<8x64xf32>
    %55 = vector.extract_strided_slice %50 {offsets = [0, 128], sizes = [8, 64], strides = [1, 1]} : vector<8x192xf32> to vector<8x64xf32>
    %56 = arith.mulf %54, %34 : vector<8x64xf32>
    %57 = arith.mulf %53, %52 : vector<8x64xf32>
    %58 = arith.addf %56, %57 : vector<8x64xf32>
    %59 = math.tanh %58 : vector<8x64xf32>
    %60 = arith.mulf %55, %59 : vector<8x64xf32>
    %c2_i32 = arith.constant 2 : i32
    %c8_i32_26 = arith.constant 8 : i32
    %61 = arith.muli %c2_i32, %c8_i32_26 : i32
    %62 = tpu.assume_multiple %61, 8 : i32
    %63 = arith.index_cast %62 : i32 to index
    %c0_27 = arith.constant 0 : index
    %64 = vector.load %arg8[%63, %c0_27] : memref<64x256xf32, #tpu.memory_space<vmem>>, vector<8x256xf32>
    %cst_28 = arith.constant dense<0.000000e+00> : vector<8x256xf32>
    %65 = tpu.matmul %60, %10, %cst_28 {dimension_numbers = #tpu.dot_dimension_numbers<[1], [0], [0], [1], [0, 0, 1, 1], [], []>} : vector<8x64xf32>, vector<64x256xf32>, vector<8x256xf32> -> vector<8x256xf32>
    %66 = arith.addf %64, %65 : vector<8x256xf32>
    %67 = vector.extract_strided_slice %66 {offsets = [0, 0], sizes = [8, 192], strides = [1, 1]} : vector<8x256xf32> to vector<8x192xf32>
    %cst_29 = arith.constant 5.000000e-01 : f32
    %68 = vector.broadcast %cst_29 : f32 to vector<8x192xf32>
    %69 = arith.mulf %68, %67 : vector<8x192xf32>
    %70 = math.tanh %69 : vector<8x192xf32>
    %cst_30 = arith.constant 5.000000e-01 : f32
    %71 = vector.broadcast %cst_30 : f32 to vector<8x192xf32>
    %72 = arith.mulf %71, %70 : vector<8x192xf32>
    %cst_31 = arith.constant 5.000000e-01 : f32
    %73 = vector.broadcast %cst_31 : f32 to vector<8x192xf32>
    %74 = arith.addf %72, %73 : vector<8x192xf32>
    %75 = vector.extract_strided_slice %66 {offsets = [0, 192], sizes = [8, 64], strides = [1, 1]} : vector<8x256xf32> to vector<8x64xf32>
    %76 = math.tanh %75 : vector<8x64xf32>
    %77 = vector.extract_strided_slice %74 {offsets = [0, 0], sizes = [8, 64], strides = [1, 1]} : vector<8x192xf32> to vector<8x64xf32>
    %78 = vector.extract_strided_slice %74 {offsets = [0, 64], sizes = [8, 64], strides = [1, 1]} : vector<8x192xf32> to vector<8x64xf32>
    %79 = vector.extract_strided_slice %74 {offsets = [0, 128], sizes = [8, 64], strides = [1, 1]} : vector<8x192xf32> to vector<8x64xf32>
    %80 = arith.mulf %78, %58 : vector<8x64xf32>
    %81 = arith.mulf %77, %76 : vector<8x64xf32>
    %82 = arith.addf %80, %81 : vector<8x64xf32>
    %83 = math.tanh %82 : vector<8x64xf32>
    %84 = arith.mulf %79, %83 : vector<8x64xf32>
    %c3_i32 = arith.constant 3 : i32
    %c8_i32_32 = arith.constant 8 : i32
    %85 = arith.muli %c3_i32, %c8_i32_32 : i32
    %86 = tpu.assume_multiple %85, 8 : i32
    %87 = arith.index_cast %86 : i32 to index
    %c0_33 = arith.constant 0 : index
    %88 = vector.load %arg8[%87, %c0_33] : memref<64x256xf32, #tpu.memory_space<vmem>>, vector<8x256xf32>
    %cst_34 = arith.constant dense<0.000000e+00> : vector<8x256xf32>
    %89 = tpu.matmul %84, %10, %cst_34 {dimension_numbers = #tpu.dot_dimension_numbers<[1], [0], [0], [1], [0, 0, 1, 1], [], []>} : vector<8x64xf32>, vector<64x256xf32>, vector<8x256xf32> -> vector<8x256xf32>
    %90 = arith.addf %88, %89 : vector<8x256xf32>
    %91 = vector.extract_strided_slice %90 {offsets = [0, 0], sizes = [8, 192], strides = [1, 1]} : vector<8x256xf32> to vector<8x192xf32>
    %cst_35 = arith.constant 5.000000e-01 : f32
    %92 = vector.broadcast %cst_35 : f32 to vector<8x192xf32>
    %93 = arith.mulf %92, %91 : vector<8x192xf32>
    %94 = math.tanh %93 : vector<8x192xf32>
    %cst_36 = arith.constant 5.000000e-01 : f32
    %95 = vector.broadcast %cst_36 : f32 to vector<8x192xf32>
    %96 = arith.mulf %95, %94 : vector<8x192xf32>
    %cst_37 = arith.constant 5.000000e-01 : f32
    %97 = vector.broadcast %cst_37 : f32 to vector<8x192xf32>
    %98 = arith.addf %96, %97 : vector<8x192xf32>
    %99 = vector.extract_strided_slice %90 {offsets = [0, 192], sizes = [8, 64], strides = [1, 1]} : vector<8x256xf32> to vector<8x64xf32>
    %100 = math.tanh %99 : vector<8x64xf32>
    %101 = vector.extract_strided_slice %98 {offsets = [0, 0], sizes = [8, 64], strides = [1, 1]} : vector<8x192xf32> to vector<8x64xf32>
    %102 = vector.extract_strided_slice %98 {offsets = [0, 64], sizes = [8, 64], strides = [1, 1]} : vector<8x192xf32> to vector<8x64xf32>
    %103 = vector.extract_strided_slice %98 {offsets = [0, 128], sizes = [8, 64], strides = [1, 1]} : vector<8x192xf32> to vector<8x64xf32>
    %104 = arith.mulf %102, %82 : vector<8x64xf32>
    %105 = arith.mulf %101, %100 : vector<8x64xf32>
    %106 = arith.addf %104, %105 : vector<8x64xf32>
    %107 = math.tanh %106 : vector<8x64xf32>
    %108 = arith.mulf %103, %107 : vector<8x64xf32>
    %c4_i32 = arith.constant 4 : i32
    %c8_i32_38 = arith.constant 8 : i32
    %109 = arith.muli %c4_i32, %c8_i32_38 : i32
    %110 = tpu.assume_multiple %109, 8 : i32
    %111 = arith.index_cast %110 : i32 to index
    %c0_39 = arith.constant 0 : index
    %112 = vector.load %arg8[%111, %c0_39] : memref<64x256xf32, #tpu.memory_space<vmem>>, vector<8x256xf32>
    %cst_40 = arith.constant dense<0.000000e+00> : vector<8x256xf32>
    %113 = tpu.matmul %108, %10, %cst_40 {dimension_numbers = #tpu.dot_dimension_numbers<[1], [0], [0], [1], [0, 0, 1, 1], [], []>} : vector<8x64xf32>, vector<64x256xf32>, vector<8x256xf32> -> vector<8x256xf32>
    %114 = arith.addf %112, %113 : vector<8x256xf32>
    %115 = vector.extract_strided_slice %114 {offsets = [0, 0], sizes = [8, 192], strides = [1, 1]} : vector<8x256xf32> to vector<8x192xf32>
    %cst_41 = arith.constant 5.000000e-01 : f32
    %116 = vector.broadcast %cst_41 : f32 to vector<8x192xf32>
    %117 = arith.mulf %116, %115 : vector<8x192xf32>
    %118 = math.tanh %117 : vector<8x192xf32>
    %cst_42 = arith.constant 5.000000e-01 : f32
    %119 = vector.broadcast %cst_42 : f32 to vector<8x192xf32>
    %120 = arith.mulf %119, %118 : vector<8x192xf32>
    %cst_43 = arith.constant 5.000000e-01 : f32
    %121 = vector.broadcast %cst_43 : f32 to vector<8x192xf32>
    %122 = arith.addf %120, %121 : vector<8x192xf32>
    %123 = vector.extract_strided_slice %114 {offsets = [0, 192], sizes = [8, 64], strides = [1, 1]} : vector<8x256xf32> to vector<8x64xf32>
    %124 = math.tanh %123 : vector<8x64xf32>
    %125 = vector.extract_strided_slice %122 {offsets = [0, 0], sizes = [8, 64], strides = [1, 1]} : vector<8x192xf32> to vector<8x64xf32>
    %126 = vector.extract_strided_slice %122 {offsets = [0, 64], sizes = [8, 64], strides = [1, 1]} : vector<8x192xf32> to vector<8x64xf32>
    %127 = vector.extract_strided_slice %122 {offsets = [0, 128], sizes = [8, 64], strides = [1, 1]} : vector<8x192xf32> to vector<8x64xf32>
    %128 = arith.mulf %126, %106 : vector<8x64xf32>
    %129 = arith.mulf %125, %124 : vector<8x64xf32>
    %130 = arith.addf %128, %129 : vector<8x64xf32>
    %131 = math.tanh %130 : vector<8x64xf32>
    %132 = arith.mulf %127, %131 : vector<8x64xf32>
    %c5_i32 = arith.constant 5 : i32
    %c8_i32_44 = arith.constant 8 : i32
    %133 = arith.muli %c5_i32, %c8_i32_44 : i32
    %134 = tpu.assume_multiple %133, 8 : i32
    %135 = arith.index_cast %134 : i32 to index
    %c0_45 = arith.constant 0 : index
    %136 = vector.load %arg8[%135, %c0_45] : memref<64x256xf32, #tpu.memory_space<vmem>>, vector<8x256xf32>
    %cst_46 = arith.constant dense<0.000000e+00> : vector<8x256xf32>
    %137 = tpu.matmul %132, %10, %cst_46 {dimension_numbers = #tpu.dot_dimension_numbers<[1], [0], [0], [1], [0, 0, 1, 1], [], []>} : vector<8x64xf32>, vector<64x256xf32>, vector<8x256xf32> -> vector<8x256xf32>
    %138 = arith.addf %136, %137 : vector<8x256xf32>
    %139 = vector.extract_strided_slice %138 {offsets = [0, 0], sizes = [8, 192], strides = [1, 1]} : vector<8x256xf32> to vector<8x192xf32>
    %cst_47 = arith.constant 5.000000e-01 : f32
    %140 = vector.broadcast %cst_47 : f32 to vector<8x192xf32>
    %141 = arith.mulf %140, %139 : vector<8x192xf32>
    %142 = math.tanh %141 : vector<8x192xf32>
    %cst_48 = arith.constant 5.000000e-01 : f32
    %143 = vector.broadcast %cst_48 : f32 to vector<8x192xf32>
    %144 = arith.mulf %143, %142 : vector<8x192xf32>
    %cst_49 = arith.constant 5.000000e-01 : f32
    %145 = vector.broadcast %cst_49 : f32 to vector<8x192xf32>
    %146 = arith.addf %144, %145 : vector<8x192xf32>
    %147 = vector.extract_strided_slice %138 {offsets = [0, 192], sizes = [8, 64], strides = [1, 1]} : vector<8x256xf32> to vector<8x64xf32>
    %148 = math.tanh %147 : vector<8x64xf32>
    %149 = vector.extract_strided_slice %146 {offsets = [0, 0], sizes = [8, 64], strides = [1, 1]} : vector<8x192xf32> to vector<8x64xf32>
    %150 = vector.extract_strided_slice %146 {offsets = [0, 64], sizes = [8, 64], strides = [1, 1]} : vector<8x192xf32> to vector<8x64xf32>
    %151 = vector.extract_strided_slice %146 {offsets = [0, 128], sizes = [8, 64], strides = [1, 1]} : vector<8x192xf32> to vector<8x64xf32>
    %152 = arith.mulf %150, %130 : vector<8x64xf32>
    %153 = arith.mulf %149, %148 : vector<8x64xf32>
    %154 = arith.addf %152, %153 : vector<8x64xf32>
    %155 = math.tanh %154 : vector<8x64xf32>
    %156 = arith.mulf %151, %155 : vector<8x64xf32>
    %c6_i32 = arith.constant 6 : i32
    %c8_i32_50 = arith.constant 8 : i32
    %157 = arith.muli %c6_i32, %c8_i32_50 : i32
    %158 = tpu.assume_multiple %157, 8 : i32
    %159 = arith.index_cast %158 : i32 to index
    %c0_51 = arith.constant 0 : index
    %160 = vector.load %arg8[%159, %c0_51] : memref<64x256xf32, #tpu.memory_space<vmem>>, vector<8x256xf32>
    %cst_52 = arith.constant dense<0.000000e+00> : vector<8x256xf32>
    %161 = tpu.matmul %156, %10, %cst_52 {dimension_numbers = #tpu.dot_dimension_numbers<[1], [0], [0], [1], [0, 0, 1, 1], [], []>} : vector<8x64xf32>, vector<64x256xf32>, vector<8x256xf32> -> vector<8x256xf32>
    %162 = arith.addf %160, %161 : vector<8x256xf32>
    %163 = vector.extract_strided_slice %162 {offsets = [0, 0], sizes = [8, 192], strides = [1, 1]} : vector<8x256xf32> to vector<8x192xf32>
    %cst_53 = arith.constant 5.000000e-01 : f32
    %164 = vector.broadcast %cst_53 : f32 to vector<8x192xf32>
    %165 = arith.mulf %164, %163 : vector<8x192xf32>
    %166 = math.tanh %165 : vector<8x192xf32>
    %cst_54 = arith.constant 5.000000e-01 : f32
    %167 = vector.broadcast %cst_54 : f32 to vector<8x192xf32>
    %168 = arith.mulf %167, %166 : vector<8x192xf32>
    %cst_55 = arith.constant 5.000000e-01 : f32
    %169 = vector.broadcast %cst_55 : f32 to vector<8x192xf32>
    %170 = arith.addf %168, %169 : vector<8x192xf32>
    %171 = vector.extract_strided_slice %162 {offsets = [0, 192], sizes = [8, 64], strides = [1, 1]} : vector<8x256xf32> to vector<8x64xf32>
    %172 = math.tanh %171 : vector<8x64xf32>
    %173 = vector.extract_strided_slice %170 {offsets = [0, 0], sizes = [8, 64], strides = [1, 1]} : vector<8x192xf32> to vector<8x64xf32>
    %174 = vector.extract_strided_slice %170 {offsets = [0, 64], sizes = [8, 64], strides = [1, 1]} : vector<8x192xf32> to vector<8x64xf32>
    %175 = vector.extract_strided_slice %170 {offsets = [0, 128], sizes = [8, 64], strides = [1, 1]} : vector<8x192xf32> to vector<8x64xf32>
    %176 = arith.mulf %174, %154 : vector<8x64xf32>
    %177 = arith.mulf %173, %172 : vector<8x64xf32>
    %178 = arith.addf %176, %177 : vector<8x64xf32>
    %179 = math.tanh %178 : vector<8x64xf32>
    %180 = arith.mulf %175, %179 : vector<8x64xf32>
    %c7_i32 = arith.constant 7 : i32
    %c8_i32_56 = arith.constant 8 : i32
    %181 = arith.muli %c7_i32, %c8_i32_56 : i32
    %182 = tpu.assume_multiple %181, 8 : i32
    %183 = arith.index_cast %182 : i32 to index
    %c0_57 = arith.constant 0 : index
    %184 = vector.load %arg8[%183, %c0_57] : memref<64x256xf32, #tpu.memory_space<vmem>>, vector<8x256xf32>
    %cst_58 = arith.constant dense<0.000000e+00> : vector<8x256xf32>
    %185 = tpu.matmul %180, %10, %cst_58 {dimension_numbers = #tpu.dot_dimension_numbers<[1], [0], [0], [1], [0, 0, 1, 1], [], []>} : vector<8x64xf32>, vector<64x256xf32>, vector<8x256xf32> -> vector<8x256xf32>
    %186 = arith.addf %184, %185 : vector<8x256xf32>
    %187 = vector.extract_strided_slice %186 {offsets = [0, 0], sizes = [8, 192], strides = [1, 1]} : vector<8x256xf32> to vector<8x192xf32>
    %cst_59 = arith.constant 5.000000e-01 : f32
    %188 = vector.broadcast %cst_59 : f32 to vector<8x192xf32>
    %189 = arith.mulf %188, %187 : vector<8x192xf32>
    %190 = math.tanh %189 : vector<8x192xf32>
    %cst_60 = arith.constant 5.000000e-01 : f32
    %191 = vector.broadcast %cst_60 : f32 to vector<8x192xf32>
    %192 = arith.mulf %191, %190 : vector<8x192xf32>
    %cst_61 = arith.constant 5.000000e-01 : f32
    %193 = vector.broadcast %cst_61 : f32 to vector<8x192xf32>
    %194 = arith.addf %192, %193 : vector<8x192xf32>
    %195 = vector.extract_strided_slice %186 {offsets = [0, 192], sizes = [8, 64], strides = [1, 1]} : vector<8x256xf32> to vector<8x64xf32>
    %196 = math.tanh %195 : vector<8x64xf32>
    %197 = vector.extract_strided_slice %194 {offsets = [0, 0], sizes = [8, 64], strides = [1, 1]} : vector<8x192xf32> to vector<8x64xf32>
    %198 = vector.extract_strided_slice %194 {offsets = [0, 64], sizes = [8, 64], strides = [1, 1]} : vector<8x192xf32> to vector<8x64xf32>
    %199 = vector.extract_strided_slice %194 {offsets = [0, 128], sizes = [8, 64], strides = [1, 1]} : vector<8x192xf32> to vector<8x64xf32>
    %200 = arith.mulf %198, %178 : vector<8x64xf32>
    %201 = arith.mulf %197, %196 : vector<8x64xf32>
    %202 = arith.addf %200, %201 : vector<8x64xf32>
    %203 = math.tanh %202 : vector<8x64xf32>
    %204 = arith.mulf %199, %203 : vector<8x64xf32>
    %c8_i32_62 = arith.constant 8 : i32
    %c0_63 = arith.constant 0 : index
    %c0_64 = arith.constant 0 : index
    %205 = vector.load %arg9[%c0_63, %c0_64] : memref<8x64xf32, #tpu.memory_space<vmem>>, vector<8x64xf32>
    tpu.vector_store %arg9[%c0_63, %c0_64], %204 {strides = array<i32>} : memref<8x64xf32, #tpu.memory_space<vmem>>, vector<8x64xf32>,
    %c0_65 = arith.constant 0 : index
    %c0_66 = arith.constant 0 : index
    %206 = vector.load %arg10[%c0_65, %c0_66] : memref<8x64xf32, #tpu.memory_space<vmem>>, vector<8x64xf32>
    tpu.vector_store %arg10[%c0_65, %c0_66], %202 {strides = array<i32>} : memref<8x64xf32, #tpu.memory_space<vmem>>, vector<8x64xf32>,
    %c0_i32_67 = arith.constant 0 : i32
    %207 = arith.cmpi eq, %arg0, %c0_i32_67 : i32
    %208 = arith.extui %207 : i1 to i32
    %c0_i32_68 = arith.constant 0 : i32
    %209 = arith.cmpi ne, %208, %c0_i32_68 : i32
    scf.if %209 {
      %c0_69 = arith.constant 0 : index
      %c0_70 = arith.constant 0 : index
      %210 = vector.load %arg5[%c0_69, %c0_70] : memref<64x2xf32, #tpu.memory_space<vmem>>, vector<64x2xf32>
      %cst_71 = arith.constant dense<0.000000e+00> : vector<8x2xf32>
      %211 = tpu.matmul %204, %210, %cst_71 {dimension_numbers = #tpu.dot_dimension_numbers<[1], [0], [0], [1], [0, 0, 1, 1], [], []>} : vector<8x64xf32>, vector<64x2xf32>, vector<8x2xf32> -> vector<8x2xf32>
      %c0_72 = arith.constant 0 : index
      %c0_73 = arith.constant 0 : index
      %212 = vector.load %arg6[%c0_72, %c0_73] : memref<1x2xf32, #tpu.memory_space<vmem>>, vector<1x2xf32>
      %213 = vector.broadcast %212 : vector<1x2xf32> to vector<8x2xf32>
      %214 = arith.addf %211, %213 : vector<8x2xf32>
      %c0_74 = arith.constant 0 : index
      %c0_75 = arith.constant 0 : index
      %215 = vector.load %arg7[%c0_74, %c0_75] : memref<8x2xf32, #tpu.memory_space<vmem>>, vector<8x2xf32>
      tpu.vector_store %arg7[%c0_74, %c0_75], %214 {strides = array<i32>} : memref<8x2xf32, #tpu.memory_space<vmem>>, vector<8x2xf32>,
    } else {
    }
    return
  }
  func.func @transform_0(%arg0: i32) -> (i32, i32) {
    %c0_i32 = arith.constant 0 : i32
    %c0_i32_0 = arith.constant 0 : i32
    return %arg0, %c0_i32 : i32, i32
  }
  func.func @transform_1(%arg0: i32) -> (i32, i32) {
    %c0_i32 = arith.constant 0 : i32
    %c0_i32_0 = arith.constant 0 : i32
    %c0_i32_1 = arith.constant 0 : i32
    return %c0_i32, %c0_i32_0 : i32, i32
  }
  func.func @transform_2(%arg0: i32) -> (i32, i32) {
    %c0_i32 = arith.constant 0 : i32
    %c0_i32_0 = arith.constant 0 : i32
    %c0_i32_1 = arith.constant 0 : i32
    return %c0_i32, %c0_i32_0 : i32, i32
  }
  func.func @transform_3(%arg0: i32) -> (i32, i32) {
    %c0_i32 = arith.constant 0 : i32
    %c0_i32_0 = arith.constant 0 : i32
    %c0_i32_1 = arith.constant 0 : i32
    return %c0_i32, %c0_i32_0 : i32, i32
  }
  func.func @transform_4(%arg0: i32) -> (i32, i32) {
    %c0_i32 = arith.constant 0 : i32
    %c0_i32_0 = arith.constant 0 : i32
    %c0_i32_1 = arith.constant 0 : i32
    return %c0_i32, %c0_i32_0 : i32, i32
  }
  func.func @transform_5(%arg0: i32) -> (i32, i32) {
    %c0_i32 = arith.constant 0 : i32
    %c0_i32_0 = arith.constant 0 : i32
    %c0_i32_1 = arith.constant 0 : i32
    return %c0_i32, %c0_i32_0 : i32, i32
  }
  func.func @transform_6(%arg0: i32) -> (i32, i32) {
    %c0_i32 = arith.constant 0 : i32
    %c0_i32_0 = arith.constant 0 : i32
    %c0_i32_1 = arith.constant 0 : i32
    return %c0_i32, %c0_i32_0 : i32, i32
  }
}

</mosaic_0001>

<bundles_post_ra>
// kernel: rnn_forward.1
= control target key start
LH: loop header
LB: loop body
LE: loop exit
PB: predicated region body
PF: predicated region fallthrough
CT: control target
= control target key end

     0   :  { %vm27_vm0 = vcmask 523264   ;;  %v1855_v3 = vmov 0.0   ;;  %vm1858_vm1 = vmmov 0   ;;  %vm1420_vm2 = vcmask 15360   ;;  %s2627_s1 = inlined_call_operand.vmem [shape: f32[512,256], index: 1, kind: input, shape index: {}]   ;;  %s2628_s0 = inlined_call_operand.vmem [shape: f32[64,512], index: 0, kind: input, shape index: {}]   ;;  %s2629_s3 = inlined_call_operand.vmem [shape: f32[64,256], index: 3, kind: input, shape index: {}]   ;;  %s2630_s2 = inlined_call_operand.vmem [shape: f32[1,256], index: 2, kind: input, shape index: {}]   ;;  %s2631_s4 = inlined_call_operand.vmem [shape: f32[64,2], index: 4, kind: input, shape index: {}]   ;;  %s2632_s5 = inlined_call_operand.vmem [shape: f32[1,2], index: 5, kind: input, shape index: {}]   ;;  %s2633_s6 = inlined_call_operand.vmem [shape: f32[8,2], index: 6, kind: output, shape index: {}]  }
   0x1   :  { %v63_v0 = vld [vmem:[%s2627_s1 + $0x8] sm:$0xff]  ;;  %v65_v1 = vld [vmem:[%s2627_s1 + $0x18] sm:$0xff]  ;;  %v62_v2 = vld [vmem:[%s2627_s1] sm:$0xff]  ;;  %535 = vmatprep.mubr.f32.mxu0 %v1855_v3  ;;  %28 = vst.msk [vmem:[#allocation3] sm:$0xff] %vm27_vm0, %v1855_v3 }
   0x2   :  { %29 = vst.msk [vmem:[#allocation4] sm:$0xff] %vm27_vm0, %v1855_v3  ;;  %v1471_v4 = vpack.c.bf16 %v65_v1, %v63_v0  ;;  %v64_v5 = vld [vmem:[%s2627_s1 + $0x10] sm:$0xff]  ;;  %v67_v6 = vld [vmem:[%s2627_s1 + $0x28] sm:$0xff]  ;;  %v69_v7 = vld [vmem:[%s2627_s1 + $0x38] sm:$0xff] }
   0x3   :  { %v1473_v8 = vpack.c.bf16 %v64_v5, %v62_v2  ;;  %v1475_v9 = vpack.c.bf16 %v69_v7, %v67_v6  ;;  %v66_v10 = vld [vmem:[%s2627_s1 + $0x20] sm:$0xff]  ;;  %v68_v11 = vld [vmem:[%s2627_s1 + $0x30] sm:$0xff]  ;;  %v71_v12 = vld [vmem:[%s2627_s1 + $0x48] sm:$0xff] }
   0x4   :  { %1472 = vmatprep.subr.bf16.mxu1 %v1471_v4  ;;  %v73_v13 = vld [vmem:[%s2627_s1 + $0x58] sm:$0xff]  ;;  %v1477_v14 = vpack.c.bf16 %v68_v11, %v66_v10  ;;  %v70_v16 = vld [vmem:[%s2627_s1 + $0x40] sm:$0xff]  ;;  %v72_v17 = vld [vmem:[%s2627_s1 + $0x50] sm:$0xff] }
   0x5   :  { %1474 = vmatpush1.bf16.msra.mxu1 %v1473_v8  ;;  %v1479_v15 = vpack.c.bf16 %v73_v13, %v71_v12  ;;  %v75_v18 = vld [vmem:[%s2627_s1 + $0x68] sm:$0xff]  ;;  %v77_v19 = vld [vmem:[%s2627_s1 + $0x78] sm:$0xff]  ;;  %v1481_v20 = vpack.c.bf16 %v72_v17, %v70_v16  ;;  %v74_v22 = vld [vmem:[%s2627_s1 + $0x60] sm:$0xff] }
   0x6   :  { %1476 = vmatprep.subr.bf16.mxu1 %v1475_v9  ;;  %v1483_v21 = vpack.c.bf16 %v77_v19, %v75_v18  ;;  %v76_v23 = vld [vmem:[%s2627_s1 + $0x70] sm:$0xff]  ;;  %v79_v24 = vld [vmem:[%s2627_s1 + $0x88] sm:$0xff]  ;;  %v81_v25 = vld [vmem:[%s2627_s1 + $0x98] sm:$0xff] }
   0x7   :  { %v1485_v26 = vpack.c.bf16 %v76_v23, %v74_v22  ;;  %v1487_v27 = vpack.c.bf16 %v81_v25, %v79_v24  ;;  %v78_v28 = vld [vmem:[%s2627_s1 + $0x80] sm:$0xff]  ;;  %v80_v29 = vld [vmem:[%s2627_s1 + $0x90] sm:$0xff]  ;;  %v83_v30 = vld [vmem:[%s2627_s1 + $0xa8] sm:$0xff] }
   0x8   :  { %v85_v31 = vld [vmem:[%s2627_s1 + $0xb8] sm:$0xff]  ;;  %v1489_v32 = vpack.c.bf16 %v80_v29, %v78_v28  ;;  %v82_v34 = vld [vmem:[%s2627_s1 + $0xa0] sm:$0xff]  ;;  %v84_v35 = vld [vmem:[%s2627_s1 + $0xb0] sm:$0xff] }
   0x9   :  { %1478 = vmatpush1.bf16.msra.mxu1 %v1477_v14  ;;  %v1491_v33 = vpack.c.bf16 %v85_v31, %v83_v30  ;;  %v87_v36 = vld [vmem:[%s2627_s1 + $0xc8] sm:$0xff]  ;;  %v89_v37 = vld [vmem:[%s2627_s1 + $0xd8] sm:$0xff]  ;;  %v1493_v38 = vpack.c.bf16 %v84_v35, %v82_v34  ;;  %v86_v40 = vld [vmem:[%s2627_s1 + $0xc0] sm:$0xff] }
   0xa   :  { %1480 = vmatprep.subr.bf16.mxu1 %v1479_v15  ;;  %v1495_v39 = vpack.c.bf16 %v89_v37, %v87_v36  ;;  %v88_v41 = vld [vmem:[%s2627_s1 + $0xd0] sm:$0xff]  ;;  %v31_v42 = vld [vmem:[%s2628_s0 + $0x8] sm:$0xff]  ;;  %v93_v44 = vld [vmem:[%s2627_s1 + $0xf8] sm:$0xff] }
   0xb   :  { %v91_v43 = vld [vmem:[%s2627_s1 + $0xe8] sm:$0xff]  ;;  %266 = vmatprep.mubr.f32.mxu1 %v31_v42  ;;  %v1497_v45 = vpack.c.bf16 %v88_v41, %v86_v40  ;;  %v90_v47 = vld [vmem:[%s2627_s1 + $0xe0] sm:$0xff]  ;;  %v92_v48 = vld [vmem:[%s2627_s1 + $0xf0] sm:$0xff] }
   0xc   :  { %v1499_v46 = vpack.c.bf16 %v93_v44, %v91_v43  ;;  %v95_v49 = vld [vmem:[%s2627_s1 + $0x108] sm:$0xff]  ;;  %v97_v50 = vld [vmem:[%s2627_s1 + $0x118] sm:$0xff]  ;;  %v1501_v51 = vpack.c.bf16 %v92_v48, %v90_v47  ;;  %v94_v53 = vld [vmem:[%s2627_s1 + $0x100] sm:$0xff] }
   0xd   :  { %1482 = vmatpush1.bf16.msra.mxu1 %v1481_v20  ;;  %v1503_v52 = vpack.c.bf16 %v97_v50, %v95_v49  ;;  %v96_v54 = vld [vmem:[%s2627_s1 + $0x110] sm:$0xff]  ;;  %v99_v55 = vld [vmem:[%s2627_s1 + $0x128] sm:$0xff]  ;;  %v101_v56 = vld [vmem:[%s2627_s1 + $0x138] sm:$0xff] }
   0xe   :  { %1484 = vmatprep.subr.bf16.mxu1 %v1483_v21  ;;  %v1505_v57 = vpack.c.bf16 %v96_v54, %v94_v53  ;;  %v1507_v58 = vpack.c.bf16 %v101_v56, %v99_v55  ;;  %v98_v59 = vld [vmem:[%s2627_s1 + $0x120] sm:$0xff]  ;;  %v100_v60 = vld [vmem:[%s2627_s1 + $0x130] sm:$0xff]  ;;  %v103_v61 = vld [vmem:[%s2627_s1 + $0x148] sm:$0xff] }
   0xf   :  { %v105_v62 = vld [vmem:[%s2627_s1 + $0x158] sm:$0xff]  ;;  %v1509_v63 = vpack.c.bf16 %v100_v60, %v98_v59  ;;  %v102_v1 = vld [vmem:[%s2627_s1 + $0x140] sm:$0xff]  ;;  %v104_v2 = vld [vmem:[%s2627_s1 + $0x150] sm:$0xff] }
  0x10   :  { %v1511_v0 = vpack.c.bf16 %v105_v62, %v103_v61  ;;  %v107_v4 = vld [vmem:[%s2627_s1 + $0x168] sm:$0xff]  ;;  %v109_v5 = vld [vmem:[%s2627_s1 + $0x178] sm:$0xff]  ;;  %v1513_v6 = vpack.c.bf16 %v104_v2, %v102_v1  ;;  %v106_v7 = vld [vmem:[%s2627_s1 + $0x160] sm:$0xff] }
  0x11   :  { %1486 = vmatpush1.bf16.msra.mxu1 %v1485_v26  ;;  %v1515_v8 = vpack.c.bf16 %v109_v5, %v107_v4  ;;  %v108_v9 = vld [vmem:[%s2627_s1 + $0x170] sm:$0xff]  ;;  %v111_v10 = vld [vmem:[%s2627_s1 + $0x188] sm:$0xff]  ;;  %v113_v11 = vld [vmem:[%s2627_s1 + $0x198] sm:$0xff] }
  0x12   :  { %1488 = vmatprep.subr.bf16.mxu1 %v1487_v27  ;;  %v445_v12 = vld [vmem:[%s2629_s3 + $0x8] sm:$0xff]  ;;  %v447_v13 = vld [vmem:[%s2629_s3 + $0x18] sm:$0xff]  ;;  %v444_v14 = vld [vmem:[%s2629_s3] sm:$0xff]  ;;  %v1517_v17 = vpack.c.bf16 %v108_v9, %v106_v7  ;;  %v1519_v21 = vpack.c.bf16 %v113_v11, %v111_v10 }
  0x13   :  { %v2061_v15 = vpack.c.bf16 %v447_v13, %v445_v12  ;;  %v446_v16 = vld [vmem:[%s2629_s3 + $0x10] sm:$0xff]  ;;  %v110_v18 = vld [vmem:[%s2627_s1 + $0x180] sm:$0xff]  ;;  %v115_v22 = vld [vmem:[%s2627_s1 + $0x1a8] sm:$0xff] }
  0x14   :  { %v112_v19 = vld [vmem:[%s2627_s1 + $0x190] sm:$0xff]  ;;  %v2072_v20 = vpack.c.bf16 %v446_v16, %v444_v14  ;;  %v449_v23 = vld [vmem:[%s2629_s3 + $0x28] sm:$0xff]  ;;  %v451_v24 = vld [vmem:[%s2629_s3 + $0x38] sm:$0xff] }
  0x15   :  { %1490 = vmatpush1.bf16.msra.mxu1 %v1489_v32  ;;  %1600 = vmatprep.subr.bf16.mxu0 %v2061_v15  ;;  %v117_v25 = vld [vmem:[%s2627_s1 + $0x1b8] sm:$0xff]  ;;  %v2088_v26 = vpack.c.bf16 %v451_v24, %v449_v23  ;;  %v448_v27 = vld [vmem:[%s2629_s3 + $0x20] sm:$0xff]  ;;  %v450_v28 = vld [vmem:[%s2629_s3 + $0x30] sm:$0xff]  ;;  %v1521_v30 = vpack.c.bf16 %v112_v19, %v110_v18 }
  0x16   :  { %1492 = vmatprep.subr.bf16.mxu1 %v1491_v33  ;;  %1602 = vmatpush1.bf16.msra.mxu0 %v2072_v20  ;;  %v2096_v29 = vpack.c.bf16 %v450_v28, %v448_v27  ;;  %v114_v31 = vld [vmem:[%s2627_s1 + $0x1a0] sm:$0xff]  ;;  %v116_v32 = vld [vmem:[%s2627_s1 + $0x1b0] sm:$0xff]  ;;  %v453_v33 = vld [vmem:[%s2629_s3 + $0x48] sm:$0xff]  ;;  %v1523_v34 = vpack.c.bf16 %v117_v25, %v115_v22 }
  0x17   :  { %1604 = vmatprep.subr.bf16.mxu0 %v2088_v26  ;;  %v455_v35 = vld [vmem:[%s2629_s3 + $0x58] sm:$0xff]  ;;  %v452_v36 = vld [vmem:[%s2629_s3 + $0x40] sm:$0xff]  ;;  %v454_v37 = vld [vmem:[%s2629_s3 + $0x50] sm:$0xff]  ;;  %v1525_v42 = vpack.c.bf16 %v116_v32, %v114_v31 }
  0x18   :  { %v2124_v40 = vpack.c.bf16 %v455_v35, %v453_v33  ;;  %v2126_v41 = vpack.c.bf16 %v454_v37, %v452_v36  ;;  %v457_v43 = vld [vmem:[%s2629_s3 + $0x68] sm:$0xff]  ;;  %v459_v44 = vld [vmem:[%s2629_s3 + $0x78] sm:$0xff]  ;;  %v118_v47 = vld [vmem:[%s2627_s1 + $0x1c0] sm:$0xff] }
  0x19   :  { %1494 = vmatpush1.bf16.msra.mxu1 %v1493_v38  ;;  %v119_v38 = vld [vmem:[%s2627_s1 + $0x1c8] sm:$0xff]  ;;  %v120_v48 = vld [vmem:[%s2627_s1 + $0x1d0] sm:$0xff]  ;;  %v2144_v49 = vpack.c.bf16 %v459_v44, %v457_v43  ;;  %v122_v56 = vld [vmem:[%s2627_s1 + $0x1e0] sm:$0xff] }
  0x1a   :  { %1496 = vmatprep.subr.bf16.mxu1 %v1495_v39  ;;  %v121_v39 = vld [vmem:[%s2627_s1 + $0x1d8] sm:$0xff]  ;;  %1606 = vmatpush1.bf16.msra.mxu0 %v2096_v29  ;;  %v458_v50 = vld [vmem:[%s2629_s3 + $0x70] sm:$0xff]  ;;  %v1529_v54 = vpack.c.bf16 %v120_v48, %v118_v47  ;;  %v460_v60 = vld [vmem:[#allocation3] sm:$0xff] }
  0x1b   :  { %1608 = vmatprep.subr.bf16.mxu0 %v2124_v40  ;;  %v129_v59 = vld [vmem:[%s2627_s1 + $0x218] sm:$0xff]  ;;  %v131_v1 = vld [vmem:[%s2627_s1 + $0x228] sm:$0xff]  ;;  %v30_v4 = vld [vmem:[%s2628_s0] sm:$0xff] }
  0x1c   :  { %v133_v2 = vld [vmem:[%s2627_s1 + $0x238] sm:$0xff]  ;;  %v130_v7 = vld [vmem:[%s2627_s1 + $0x220] sm:$0xff]  ;;  %v35_v9 = vld [vmem:[%s2628_s0 + $0x28] sm:$0xff] }
  0x1d   :  { %1498 = vmatpush1.bf16.msra.mxu1 %v1497_v45  ;;  %v456_v45 = vld [vmem:[%s2629_s3 + $0x60] sm:$0xff]  ;;  %v135_v10 = vld [vmem:[%s2627_s1 + $0x248] sm:$0xff]  ;;  %v137_v11 = vld [vmem:[%s2627_s1 + $0x258] sm:$0xff] }
  0x1e   :  { %1500 = vmatprep.subr.bf16.mxu1 %v1499_v46  ;;  %v1527_v46 = vpack.c.bf16 %v121_v39, %v119_v38  ;;  %1610 = vmatpush1.bf16.msra.mxu0 %v2126_v41  ;;  %v2156_v53 = vpack.c.bf16 %v458_v50, %v456_v45  ;;  %v34_v13 = vld [vmem:[%s2628_s0 + $0x20] sm:$0xff]  ;;  %v1543_v14 = vpack.c.bf16 %v137_v11, %v135_v10  ;;  %v39_v18 = vld [vmem:[%s2628_s0 + $0x48] sm:$0xff]  ;;  %v140_v27 = vld [vmem:[%s2627_s1 + $0x270] sm:$0xff] }
  0x1f   :  { %1612 = vmatprep.subr.bf16.mxu0 %v2144_v49  ;;  %v134_v16 = vld [vmem:[%s2627_s1 + $0x240] sm:$0xff]  ;;  %v139_v19 = vld [vmem:[%s2627_s1 + $0x268] sm:$0xff]  ;;  %v145_v31 = vld [vmem:[%s2627_s1 + $0x298] sm:$0xff] }
  0x20   :  { %v38_v23 = vld [vmem:[%s2628_s0 + $0x40] sm:$0xff]  ;;  %v43_v28 = vld [vmem:[%s2628_s0 + $0x68] sm:$0xff]  ;;  %v144_v36 = vld [vmem:[%s2627_s1 + $0x290] sm:$0xff] }
  0x21   :  { %1502 = vmatpush1.bf16.msra.mxu1 %v1501_v51  ;;  %v123_v51 = vld [vmem:[%s2627_s1 + $0x1e8] sm:$0xff]  ;;  %v138_v25 = vld [vmem:[%s2627_s1 + $0x260] sm:$0xff]  ;;  %v149_v39 = vld [vmem:[%s2627_s1 + $0x2b8] sm:$0xff] }
  0x22   :  { %1504 = vmatprep.subr.bf16.mxu1 %v1503_v52  ;;  %v125_v52 = vld [vmem:[%s2627_s1 + $0x1f8] sm:$0xff]  ;;  %1614 = vmatpush1.bf16.msra.mxu0 %v2156_v53  ;;  %v1549_v32 = vpack.c.bf16 %v140_v27, %v138_v25  ;;  %v42_v33 = vld [vmem:[%s2628_s0 + $0x60] sm:$0xff]  ;;  %v47_v37 = vld [vmem:[%s2628_s0 + $0x88] sm:$0xff] }
  0x23   :  { %v1531_v55 = vpack.c.bf16 %v125_v52, %v123_v51  ;;  %1616 = vmatprep.subr.bf16.mxu0 %v2061_v15  ;;  %v142_v35 = vld [vmem:[%s2627_s1 + $0x280] sm:$0xff]  ;;  %v147_v38 = vld [vmem:[%s2627_s1 + $0x2a8] sm:$0xff]  ;;  %v153_v50 = vld [vmem:[%s2627_s1 + $0x2d8] sm:$0xff] }
  0x24   :  { %v46_v43 = vld [vmem:[%s2628_s0 + $0x80] sm:$0xff]  ;;  %v1555_v44 = vpack.c.bf16 %v149_v39, %v147_v38  ;;  %v51_v47 = vld [vmem:[%s2628_s0 + $0xa8] sm:$0xff]  ;;  %v33_v10 = vld [vmem:[%s2628_s0 + $0x18] sm:$0xff] }
  0x25   :  { %1506 = vmatpush1.bf16.msra.mxu1 %v1505_v57  ;;  %v124_v57 = vld [vmem:[%s2627_s1 + $0x1f0] sm:$0xff]  ;;  %1433 = vmatmul.mubr.msk.f32.vlgmr.msra.gmra.mrb[0].mxu0 %vm27_vm0, %v460_v60  ;;  %v146_v45 = vld [vmem:[%s2627_s1 + $0x2a0] sm:$0xff]  ;;  %v151_v48 = vld [vmem:[%s2627_s1 + $0x2c8] sm:$0xff] }
  0x26   :  { %1508 = vmatprep.subr.bf16.mxu1 %v1507_v58  ;;  %v127_v58 = vld [vmem:[%s2627_s1 + $0x208] sm:$0xff]  ;;  %v1533_v61 = vpack.c.bf16 %v124_v57, %v122_v56  ;;  %1618 = vmatpush1.bf16.msra.mxu0 %v2072_v20  ;;  %v50_v52 = vld [vmem:[%s2628_s0 + $0xa0] sm:$0xff]  ;;  %v152_v56 = vld [vmem:[%s2627_s1 + $0x2d0] sm:$0xff] }
  0x27   :  { %v1535_v62 = vpack.c.bf16 %v129_v59, %v127_v58  ;;  %646 = vmatprep.mubr.f32.mxu0 %v1855_v3  ;;  %1620 = vmatprep.subr.bf16.mxu0 %v2088_v26  ;;  %v55_v57 = vld [vmem:[%s2628_s0 + $0xc8] sm:$0xff]  ;;  %v157_v59 = vld [vmem:[%s2627_s1 + $0x2f8] sm:$0xff]  ;;  %v176_v38 = vld [vmem:[%s2627_s1 + $0x390] sm:$0xff] }
  0x28   :  { %v155_v58 = vld [vmem:[%s2627_s1 + $0x2e8] sm:$0xff]  ;;  %v173_v27 = vld [vmem:[%s2627_s1 + $0x378] sm:$0xff] }
  0x29   :  { %1510 = vmatpush1.bf16.msra.mxu1 %v1509_v63  ;;  %v126_v63 = vld [vmem:[%s2627_s1 + $0x200] sm:$0xff]  ;;  %v163_v11 = vld [vmem:[%s2627_s1 + $0x328] sm:$0xff] }
  0x2a   :  { %1512 = vmatprep.subr.bf16.mxu1 %v1511_v0  ;;  %v128_v0 = vld [vmem:[%s2627_s1 + $0x210] sm:$0xff]  ;;  %1622 = vmatpush1.bf16.msra.mxu0 %v2096_v29  ;;  %v171_v25 = vld [vmem:[%s2627_s1 + $0x368] sm:$0xff] }
  0x2b   :  { %v1537_v5 = vpack.c.bf16 %v128_v0, %v126_v63  ;;  %1624 = vmatprep.subr.bf16.mxu0 %v2124_v40  ;;  %v154_v63 = vld [vmem:[%s2627_s1 + $0x2e0] sm:$0xff]  ;;  %v156_v0 = vld [vmem:[%s2627_s1 + $0x2f0] sm:$0xff]  ;;  %v179_v39 = vld [vmem:[%s2627_s1 + $0x3a8] sm:$0xff] }
  0x2d   :  { %1514 = vmatpush1.bf16.msra.mxu1 %v1513_v6  ;;  %v1539_v6 = vpack.c.bf16 %v133_v2, %v131_v1  ;;  %v59_v1 = vld [vmem:[%s2628_s0 + $0xe8] sm:$0xff] }
  0x2e   :  { %1516 = vmatprep.subr.bf16.mxu1 %v1515_v8  ;;  %v132_v8 = vld [vmem:[%s2627_s1 + $0x230] sm:$0xff]  ;;  %1626 = vmatpush1.bf16.msra.mxu0 %v2126_v41  ;;  %v159_v2 = vld [vmem:[%s2627_s1 + $0x308] sm:$0xff] }
  0x2f   :  { %v1541_v12 = vpack.c.bf16 %v132_v8, %v130_v7  ;;  %1628 = vmatprep.subr.bf16.mxu0 %v2144_v49  ;;  %v158_v8 = vld [vmem:[%s2627_s1 + $0x300] sm:$0xff] }
  0x31   :  { %1518 = vmatpush1.bf16.msra.mxu1 %v1517_v17  ;;  %v136_v17 = vld [vmem:[%s2627_s1 + $0x250] sm:$0xff] }
  0x32   :  { %1520 = vmatprep.subr.bf16.mxu1 %v1519_v21  ;;  %v141_v21 = vld [vmem:[%s2627_s1 + $0x278] sm:$0xff]  ;;  %v1545_v22 = vpack.c.bf16 %v136_v17, %v134_v16  ;;  %1630 = vmatpush1.bf16.msra.mxu0 %v2156_v53  ;;  %v162_v16 = vld [vmem:[%s2627_s1 + $0x320] sm:$0xff]  ;;  %v164_v17 = vld [vmem:[%s2627_s1 + $0x330] sm:$0xff] }
  0x33   :  { %v1547_v24 = vpack.c.bf16 %v141_v21, %v139_v19  ;;  %1632 = vmatprep.subr.bf16.mxu0 %v2061_v15  ;;  %v169_v19 = vld [vmem:[%s2627_s1 + $0x358] sm:$0xff]  ;;  %v1573_v21 = vpack.c.bf16 %v164_v17, %v162_v16  ;;  %v192_v17 = vlaneseq }
  0x35   :  { %1522 = vmatpush1.bf16.msra.mxu1 %v1521_v30  ;;  %v143_v30 = vld [vmem:[%s2627_s1 + $0x288] sm:$0xff] }
  0x36   :  { %1524 = vmatprep.subr.bf16.mxu1 %v1523_v34  ;;  %v1551_v34 = vpack.c.bf16 %v145_v31, %v143_v30  ;;  %v1579_v30 = vpack.c.bf16 %v173_v27, %v171_v25  ;;  %v170_v31 = vld [vmem:[%s2627_s1 + $0x360] sm:$0xff] }
  0x39   :  { %1526 = vmatpush1.bf16.msra.mxu1 %v1525_v42  ;;  %v1553_v42 = vpack.c.bf16 %v144_v36, %v142_v35 }
  0x3a   :  { %1528 = vmatprep.subr.bf16.mxu1 %v1527_v46  ;;  %v148_v46 = vld [vmem:[%s2627_s1 + $0x2b0] sm:$0xff] }
  0x3b   :  { %v1557_v51 = vpack.c.bf16 %v148_v46, %v146_v45  ;;  %v178_v45 = vld [vmem:[%s2627_s1 + $0x3a0] sm:$0xff]  ;;  %v180_v46 = vld [vmem:[%s2627_s1 + $0x3b0] sm:$0xff] }
  0x3d   :  { %1530 = vmatpush1.bf16.msra.mxu1 %v1529_v54  ;;  %v1559_v54 = vpack.c.bf16 %v153_v50, %v151_v48  ;;  %v185_v48 = vld [vmem:[%s2627_s1 + $0x3d8] sm:$0xff]  ;;  %v1589_v50 = vpack.c.bf16 %v180_v46, %v178_v45 }
  0x3e   :  { %1532 = vmatprep.subr.bf16.mxu1 %v1531_v55  ;;  %v150_v55 = vld [vmem:[%s2627_s1 + $0x2c0] sm:$0xff] }
  0x3f   :  { %v1561_v60 = vpack.c.bf16 %v152_v56, %v150_v55  ;;  %v187_v55 = vld [vmem:[%s2627_s1 + $0x3e8] sm:$0xff]  ;;  %v189_v56 = vld [vmem:[%s2627_s1 + $0x3f8] sm:$0xff] }
  0x41   :  { %1534 = vmatpush1.bf16.msra.mxu1 %v1533_v61  ;;  %v54_v61 = vld [vmem:[%s2628_s0 + $0xc0] sm:$0xff] }
  0x42   :  { %1536 = vmatprep.subr.bf16.mxu1 %v1535_v62  ;;  %v1563_v62 = vpack.c.bf16 %v157_v59, %v155_v58  ;;  %v1595_v58 = vpack.c.bf16 %v189_v56, %v187_v55  ;;  %v186_v59 = vld [vmem:[%s2627_s1 + $0x3e0] sm:$0xff] }
  0x44   :  { %267 = vmatmul.mubr.f32.vlgmr.msra.gmra.mrb[0].mxu1 %v30_v4  ;;  %v161_v4 = vld [vmem:[%s2627_s1 + $0x318] sm:$0xff] }
  0x45   :  { %1538 = vmatpush1.bf16.msra.mxu1 %v1537_v5  ;;  %272 = vmatprep.mubr.f32.mxu1 %v35_v9  ;;  %v1565_v5 = vpack.c.bf16 %v156_v0, %v154_v63  ;;  %v1567_v7 = vpack.c.bf16 %v161_v4, %v159_v2  ;;  %v160_v9 = vld [vmem:[%s2627_s1 + $0x310] sm:$0xff]  ;;  %v37_v63 = vld [vmem:[%s2628_s0 + $0x38] sm:$0xff] }
  0x46   :  { %1540 = vmatprep.subr.bf16.mxu1 %v1539_v6  ;;  %v58_v6 = vld [vmem:[%s2628_s0 + $0xe0] sm:$0xff]  ;;  %v36_v0 = vld [vmem:[%s2628_s0 + $0x30] sm:$0xff]  ;;  %v45_v4 = vld [vmem:[%s2628_s0 + $0x78] sm:$0xff] }
  0x47   :  { %v40_v2 = vld [vmem:[%s2628_s0 + $0x50] sm:$0xff] }
  0x48   :  { %273 = vmatmul.mubr.f32.gmra.mrb[2].mxu1 %v34_v13  ;;  %v1569_v13 = vpack.c.bf16 %v160_v9, %v158_v8  ;;  %v53_v8 = vld [vmem:[%s2628_s0 + $0xb8] sm:$0xff]  ;;  %v52_v9 = vld [vmem:[%s2628_s0 + $0xb0] sm:$0xff] }
  0x49   :  { %1542 = vmatpush1.bf16.msra.mxu1 %v1541_v12  ;;  %278 = vmatprep.mubr.f32.mxu1 %v39_v18  ;;  %v165_v12 = vld [vmem:[%s2627_s1 + $0x338] sm:$0xff]  ;;  %v167_v18 = vld [vmem:[%s2627_s1 + $0x348] sm:$0xff] }
  0x4a   :  { %1544 = vmatprep.subr.bf16.mxu1 %v1543_v14  ;;  %v1571_v14 = vpack.c.bf16 %v165_v12, %v163_v11  ;;  %v56_v11 = vld [vmem:[%s2628_s0 + $0xd0] sm:$0xff]  ;;  %v61_v12 = vld [vmem:[%s2628_s0 + $0xf8] sm:$0xff] }
  0x4c   :  { %279 = vmatmul.mubr.f32.gmra.mrb[4].mxu1 %v38_v23  ;;  %v166_v23 = vld [vmem:[%s2627_s1 + $0x340] sm:$0xff] }
  0x4d   :  { %1546 = vmatpush1.bf16.msra.mxu1 %v1545_v22  ;;  %284 = vmatprep.mubr.f32.mxu1 %v43_v28  ;;  %v1575_v22 = vpack.c.bf16 %v169_v19, %v167_v18  ;;  %v193_v18 = vshrl.u32 %v192_v17, 7 }
  0x4e   :  { %1548 = vmatprep.subr.bf16.mxu1 %v1547_v24  ;;  %v168_v24 = vld [vmem:[%s2627_s1 + $0x350] sm:$0xff] }
  0x4f   :  { %v1577_v28 = vpack.c.bf16 %v168_v24, %v166_v23  ;;  %v194_v19 = vsub.s32 0, %v193_v18 }
  0x50   :  { %285 = vmatmul.mubr.f32.gmra.mrb[6].mxu1 %v42_v33  ;;  %v175_v33 = vld [vmem:[%s2627_s1 + $0x388] sm:$0xff] }
  0x51   :  { %1550 = vmatpush1.bf16.msra.mxu1 %v1549_v32  ;;  %290 = vmatprep.mubr.f32.mxu1 %v47_v37  ;;  %v172_v32 = vld [vmem:[%s2627_s1 + $0x370] sm:$0xff]  ;;  %v174_v37 = vld [vmem:[%s2627_s1 + $0x380] sm:$0xff] }
  0x52   :  { %1552 = vmatprep.subr.bf16.mxu1 %v1551_v34  ;;  %v177_v34 = vld [vmem:[%s2627_s1 + $0x398] sm:$0xff]  ;;  %v1581_v35 = vpack.c.bf16 %v172_v32, %v170_v31 }
  0x53   :  { %v1583_v36 = vpack.c.bf16 %v177_v34, %v175_v33 }
  0x54   :  { %291 = vmatmul.mubr.f32.gmra.mrb[8].mxu1 %v46_v43  ;;  %v1585_v43 = vpack.c.bf16 %v176_v38, %v174_v37 }
  0x55   :  { %1554 = vmatpush1.bf16.msra.mxu1 %v1553_v42  ;;  %296 = vmatprep.mubr.f32.mxu1 %v51_v47  ;;  %v181_v42 = vld [vmem:[%s2627_s1 + $0x3b8] sm:$0xff]  ;;  %v183_v47 = vld [vmem:[%s2627_s1 + $0x3c8] sm:$0xff] }
  0x56   :  { %1556 = vmatprep.subr.bf16.mxu1 %v1555_v44  ;;  %v1587_v44 = vpack.c.bf16 %v181_v42, %v179_v39 }
  0x58   :  { %297 = vmatmul.mubr.f32.gmra.mrb[10].mxu1 %v50_v52  ;;  %v182_v52 = vld [vmem:[%s2627_s1 + $0x3c0] sm:$0xff] }
  0x59   :  { %1558 = vmatpush1.bf16.msra.mxu1 %v1557_v51  ;;  %302 = vmatprep.mubr.f32.mxu1 %v55_v57  ;;  %v1591_v51 = vpack.c.bf16 %v185_v48, %v183_v47 }
  0x5a   :  { %1560 = vmatprep.subr.bf16.mxu1 %v1559_v54  ;;  %v184_v54 = vld [vmem:[%s2627_s1 + $0x3d0] sm:$0xff] }
  0x5b   :  { %v1593_v57 = vpack.c.bf16 %v184_v54, %v182_v52  ;;  %v461_v54 = vld [vmem:[#allocation4] sm:$0xff] }
  0x5c   :  { %303 = vmatmul.mubr.f32.gmra.mrb[12].mxu1 %v54_v61 }
  0x5d   :  { %1562 = vmatpush1.bf16.msra.mxu1 %v1561_v60  ;;  %308 = vmatprep.mubr.f32.mxu1 %v59_v1  ;;  %v188_v60 = vld [vmem:[%s2627_s1 + $0x3f0] sm:$0xff]  ;;  %v41_v1 = vld [vmem:[%s2628_s0 + $0x58] sm:$0xff] }
  0x5e   :  { %1564 = vmatprep.subr.bf16.mxu1 %v1563_v62  ;;  %v1597_v61 = vpack.c.bf16 %v188_v60, %v186_v59  ;;  %v32_v62 = vld [vmem:[%s2628_s0 + $0x10] sm:$0xff] }
  0x60   :  { %309 = vmatmul.mubr.f32.gmra.mrb[14].mxu1 %v58_v6  ;;  %v49_v6 = vld [vmem:[%s2628_s0 + $0x98] sm:$0xff] }
  0x61   :  { %1566 = vmatpush1.bf16.msra.mxu1 %v1565_v5  ;;  %379 = vmatprep.mubr.f32.mxu1 %v33_v10  ;;  %v44_v5 = vld [vmem:[%s2628_s0 + $0x70] sm:$0xff]  ;;  %v57_v10 = vld [vmem:[%s2628_s0 + $0xd8] sm:$0xff] }
  0x62   :  { %1568 = vmatprep.subr.bf16.mxu1 %v1567_v7  ;;  %v48_v7 = vld [vmem:[%s2628_s0 + $0x90] sm:$0xff] }
  0x65   :  { %1570 = vmatpush1.bf16.msra.mxu1 %v1569_v13  ;;  %v60_v13 = vld [vmem:[%s2628_s0 + $0xf0] sm:$0xff]  ;;  %s1856_s0 = smov 64  }
  0x66   :  { %1572 = vmatprep.subr.bf16.mxu1 %v1571_v14 }
  0x69   :  { %1574 = vmatpush1.bf16.msra.mxu1 %v1573_v21  ;;  %v190_v21 = vld [vmem:[%s2630_s2] sm:$0x3] }
  0x6a   :  { %1576 = vmatprep.subr.bf16.mxu1 %v1575_v22  ;;  %v198_v22 = vsub.s32 1, %v193_v18  ;;  %v195_v23 = vrot.slane %v190_v21, %v194_v19 }
  0x6c   :  { %v199_v24 = vrot.slane %v190_v21, %v198_v22 }
  0x6d   :  { %1578 = vmatpush1.bf16.msra.mxu1 %v1577_v28 }
  0x6e   :  { %1580 = vmatprep.subr.bf16.mxu1 %v1579_v30 }
  0x71   :  { %1582 = vmatpush1.bf16.msra.mxu1 %v1581_v35 }
  0x72   :  { %1584 = vmatprep.subr.bf16.mxu1 %v1583_v36 }
  0x75   :  { %1586 = vmatpush1.bf16.msra.mxu1 %v1585_v43 }
  0x76   :  { %1588 = vmatprep.subr.bf16.mxu1 %v1587_v44 }
  0x79   :  { %1590 = vmatpush1.bf16.msra.mxu1 %v1589_v50 }
  0x7a   :  { %1592 = vmatprep.subr.bf16.mxu1 %v1591_v51 }
  0x7d   :  { %1594 = vmatpush1.bf16.msra.mxu1 %v1593_v57 }
  0x7e   :  { %1596 = vmatprep.subr.bf16.mxu1 %v1595_v58 }
  0x81   :  { %1598 = vmatpush1.bf16.msra.mxu1 %v1597_v61 }
  0x84   :  { %380 = vmatmul.mubr.f32.vlgmr.msra.gmra.mrb[0].mxu1 %v32_v62 }
  0x85   :  { %385 = vmatprep.mubr.f32.mxu1 %v37_v63 }
  0x88   :  { %386 = vmatmul.mubr.f32.gmra.mrb[2].mxu1 %v36_v0 }
  0x89   :  { %391 = vmatprep.mubr.f32.mxu1 %v41_v1 }
  0x8c   :  { %392 = vmatmul.mubr.f32.gmra.mrb[4].mxu1 %v40_v2 }
  0x8d   :  { %397 = vmatprep.mubr.f32.mxu1 %v45_v4 }
  0x90   :  { %398 = vmatmul.mubr.f32.gmra.mrb[6].mxu1 %v44_v5 }
  0x91   :  { %403 = vmatprep.mubr.f32.mxu1 %v49_v6 }
  0x94   :  { %404 = vmatmul.mubr.f32.gmra.mrb[8].mxu1 %v48_v7 }
  0x95   :  { %409 = vmatprep.mubr.f32.mxu1 %v53_v8 }
  0x98   :  { %410 = vmatmul.mubr.f32.gmra.mrb[10].mxu1 %v52_v9 }
  0x99   :  { %415 = vmatprep.mubr.f32.mxu1 %v57_v10 }
  0x9c   :  { %416 = vmatmul.mubr.f32.gmra.mrb[12].mxu1 %v56_v11 }
  0x9d   :  { %421 = vmatprep.mubr.f32.mxu1 %v61_v12 }
  0xa0   :  { %422 = vmatmul.mubr.f32.gmra.mrb[14].mxu1 %v60_v13 }
  0xf8   :  { %v537_v14 = vpop.f32.mrb[0].mxu0 }
  0xf9   :  { %v539_v16 = vpop.f32.mrb[1].mxu0 }
 0x157   :  { %v381_v25 = vpop.f32.mrb[0].mxu1 }
 0x158   :  { %v1739_v27 = vadd.f32 %v381_v25, %v195_v23  ;;  %v383_v28 = vpop.f32.mrb[1].mxu1 }
 0x159   :  { %v1741_v30 = vadd.f32 %v383_v28, %v199_v24 }
 0x15a   :  { %v1740_v31 = vadd.f32 %v1739_v27, %v537_v14 }
 0x15b   :  { %v1742_v32 = vadd.f32 %v1741_v30, %v539_v16  ;;  %v387_v33 = vpop.f32.mrb[2].mxu1 }
 0x15c   :  { %v2465_v34 = vadd.f32 %v387_v33, %v195_v23  ;;  %v389_v35 = vpop.f32.mrb[3].mxu1  ;;  %v544_v4 = vmul.f32 0.5, %v1740_v31 }
 0x15d   :  { %1791 = vtanh.f32 %v1742_v32  ;;  %v2467_v36 = vadd.f32 %v389_v35, %v199_v24  ;;  %v545_v16 = vmul.f32 0.5, %v1742_v32 }
 0x15e   :  { %1793 = vtanh.f32 %v544_v4 }
 0x15f   :  { %v393_v37 = vpop.f32.mrb[4].mxu1 }
 0x160   :  { %v2469_v38 = vadd.f32 %v393_v37, %v195_v23  ;;  %v395_v39 = vpop.f32.mrb[5].mxu1 }
 0x161   :  { %v2471_v42 = vadd.f32 %v395_v39, %v199_v24 }
 0x163   :  { %v399_v43 = vpop.f32.mrb[6].mxu1 }
 0x164   :  { %v2473_v44 = vadd.f32 %v399_v43, %v195_v23  ;;  %v401_v45 = vpop.f32.mrb[7].mxu1 }
 0x165   :  { %v2475_v46 = vadd.f32 %v401_v45, %v199_v24 }
 0x167   :  { %v1792_v47 = vpop.eup %1791  ;;  %v405_v48 = vpop.f32.mrb[8].mxu1 }
 0x168   :  { %v2477_v50 = vadd.f32 %v405_v48, %v195_v23  ;;  %559 = vrot.lane.b32.xlu0 %v1792_v47, %s1856_s0  ;;  %v407_v51 = vpop.f32.mrb[9].mxu1  ;;  %v1794_v5 = vpop.eup %1793 }
 0x169   :  { %v2480_v52 = vadd.f32 %v407_v51, %v199_v24  ;;  %v548_v6 = vmul.f32 0.5, %v1794_v5 }
 0x16b   :  { %v411_v55 = vpop.f32.mrb[10].mxu1  ;;  %v550_v7 = vadd.f32 0.5, %v548_v6 }
 0x16c   :  { %v2482_v56 = vadd.f32 %v411_v55, %v195_v23  ;;  %554 = vrot.lane.b32.xlu0 %v461_v54, %s1856_s0  ;;  %v413_v57 = vpop.f32.mrb[11].mxu1 }
 0x16d   :  { %v2485_v58 = vadd.f32 %v413_v57, %v199_v24 }
 0x16f   :  { %v417_v59 = vpop.f32.mrb[12].mxu1 }
 0x170   :  { %v2487_v60 = vadd.f32 %v417_v59, %v195_v23  ;;  %v419_v61 = vpop.f32.mrb[13].mxu1 }
 0x171   :  { %v2489_v62 = vadd.f32 %v419_v61, %v199_v24 }
 0x173   :  { %v423_v63 = vpop.f32.mrb[14].mxu1 }
 0x174   :  { %v2491_v0 = vadd.f32 %v423_v63, %v195_v23  ;;  %v425_v1 = vpop.f32.mrb[15].mxu1 }
 0x175   :  { %v2493_v2 = vadd.f32 %v425_v1, %v199_v24 }
 0x1da   :  { %v560_v8 = vpop.permute.xlu0 %559 }
 0x1db   :  { %v562_v9 = vmul.f32 %v560_v8, %v550_v7 }
 0x1dd   :  { %564 = vrot.lane.b32.xlu1 %v562_v9, %s1856_s0 }
 0x1de   :  { %v555_v10 = vpop.permute.xlu0 %554 }
 0x1df   :  { %v557_v11 = vmul.f32 %v555_v10, %v550_v7 }
 0x24f   :  { %v565_v12 = vpop.permute.xlu1 %564 }
 0x250   :  { %v567_v13 = vadd.f32 %v565_v12, %v557_v11 }
 0x252   :  { %1795 = vtanh.f32 %v567_v13 }
 0x253   :  { %1797 = vtanh.f32 %v545_v16 }
 0x25c   :  { %v1796_v14 = vpop.eup %1795 }
 0x25d   :  { %570 = vrot.lane.b32.xlu1 %v1796_v14, %s1856_s0  ;;  %v1798_v17 = vpop.eup %1797 }
 0x25e   :  { %v549_v18 = vmul.f32 0.5, %v1798_v17 }
 0x260   :  { %v551_v19 = vadd.f32 0.5, %v549_v18 }
 0x2cf   :  { %v571_v21 = vpop.permute.xlu1 %570 }
 0x2d0   :  { %v573_v22 = vmul.f32 %v571_v21, %v551_v19 }
 0x2d2   :  { %1434 = vmatmul.mubr.msk.f32.vlgmr.msra.gmra.mrb[2].mxu0 %vm27_vm0, %v573_v22 }
 0x2d3   :  { %1634 = vmatpush1.bf16.msra.mxu0 %v2072_v20  ;;  %753 = vmatprep.mubr.f32.mxu0 %v1855_v3 }
 0x2d4   :  { %1636 = vmatprep.subr.bf16.mxu0 %v2088_v26 }
 0x2d7   :  { %1638 = vmatpush1.bf16.msra.mxu0 %v2096_v29 }
 0x2d8   :  { %1640 = vmatprep.subr.bf16.mxu0 %v2124_v40 }
 0x2db   :  { %1642 = vmatpush1.bf16.msra.mxu0 %v2126_v41 }
 0x2dc   :  { %1644 = vmatprep.subr.bf16.mxu0 %v2144_v49 }
 0x2df   :  { %1646 = vmatpush1.bf16.msra.mxu0 %v2156_v53 }
 0x2e0   :  { %1648 = vmatprep.subr.bf16.mxu0 %v2061_v15 }
 0x3a5   :  { %v648_v23 = vpop.f32.mrb[2].mxu0 }
 0x3a6   :  { %v1744_v24 = vadd.f32 %v2465_v34, %v648_v23  ;;  %v650_v25 = vpop.f32.mrb[3].mxu0 }
 0x3a7   :  { %v1746_v27 = vadd.f32 %v2467_v36, %v650_v25 }
 0x3a8   :  { %v655_v30 = vmul.f32 0.5, %v1744_v24 }
 0x3a9   :  { %1799 = vtanh.f32 %v1746_v27  ;;  %v656_v36 = vmul.f32 0.5, %v1746_v27 }
 0x3aa   :  { %1801 = vtanh.f32 %v655_v30 }
 0x3b3   :  { %v1800_v28 = vpop.eup %1799 }
 0x3b4   :  { %666 = vrot.lane.b32.xlu0 %v1800_v28, %s1856_s0  ;;  %v1802_v31 = vpop.eup %1801 }
 0x3b5   :  { %v659_v32 = vmul.f32 0.5, %v1802_v31 }
 0x3b7   :  { %v661_v33 = vadd.f32 0.5, %v659_v32 }
 0x3b9   :  { %v664_v39 = vmul.f32 %v661_v33, %v567_v13 }
 0x426   :  { %v667_v35 = vpop.permute.xlu0 %666 }
 0x427   :  { %v669_v37 = vmul.f32 %v667_v35, %v661_v33 }
 0x429   :  { %671 = vrot.lane.b32.xlu1 %v669_v37, %s1856_s0 }
 0x49b   :  { %v672_v43 = vpop.permute.xlu1 %671 }
 0x49c   :  { %v674_v45 = vadd.f32 %v672_v43, %v664_v39 }
 0x49e   :  { %1803 = vtanh.f32 %v674_v45 }
 0x49f   :  { %1805 = vtanh.f32 %v656_v36 }
 0x4a8   :  { %v1804_v34 = vpop.eup %1803 }
 0x4a9   :  { %677 = vrot.lane.b32.xlu0 %v1804_v34, %s1856_s0  ;;  %v1806_v47 = vpop.eup %1805 }
 0x4aa   :  { %v660_v48 = vmul.f32 0.5, %v1806_v47 }
 0x4ac   :  { %v662_v51 = vadd.f32 0.5, %v660_v48 }
 0x51b   :  { %v678_v54 = vpop.permute.xlu0 %677 }
 0x51c   :  { %v680_v55 = vmul.f32 %v678_v54, %v662_v51 }
 0x51e   :  { %1435 = vmatmul.mubr.msk.f32.vlgmr.msra.gmra.mrb[4].mxu0 %vm27_vm0, %v680_v55 }
 0x51f   :  { %1650 = vmatpush1.bf16.msra.mxu0 %v2072_v20  ;;  %860 = vmatprep.mubr.f32.mxu0 %v1855_v3 }
 0x520   :  { %1652 = vmatprep.subr.bf16.mxu0 %v2088_v26 }
 0x523   :  { %1654 = vmatpush1.bf16.msra.mxu0 %v2096_v29 }
 0x524   :  { %1656 = vmatprep.subr.bf16.mxu0 %v2124_v40 }
 0x527   :  { %1658 = vmatpush1.bf16.msra.mxu0 %v2126_v41 }
 0x528   :  { %1660 = vmatprep.subr.bf16.mxu0 %v2144_v49 }
 0x52b   :  { %1662 = vmatpush1.bf16.msra.mxu0 %v2156_v53 }
 0x52c   :  { %1664 = vmatprep.subr.bf16.mxu0 %v2061_v15 }
 0x5f1   :  { %v755_v57 = vpop.f32.mrb[4].mxu0 }
 0x5f2   :  { %v1748_v59 = vadd.f32 %v2469_v38, %v755_v57  ;;  %v757_v61 = vpop.f32.mrb[5].mxu0 }
 0x5f3   :  { %v1750_v63 = vadd.f32 %v2471_v42, %v757_v61 }
 0x5f4   :  { %v762_v4 = vmul.f32 0.5, %v1748_v59 }
 0x5f5   :  { %1807 = vtanh.f32 %v1750_v63  ;;  %v763_v42 = vmul.f32 0.5, %v1750_v63 }
 0x5f6   :  { %1809 = vtanh.f32 %v762_v4 }
 0x5ff   :  { %v1808_v1 = vpop.eup %1807 }
 0x600   :  { %773 = vrot.lane.b32.xlu1 %v1808_v1, %s1856_s0  ;;  %v1810_v5 = vpop.eup %1809 }
 0x601   :  { %v766_v6 = vmul.f32 0.5, %v1810_v5 }
 0x603   :  { %v768_v7 = vadd.f32 0.5, %v766_v6 }
 0x605   :  { %v771_v10 = vmul.f32 %v768_v7, %v674_v45 }
 0x672   :  { %v774_v8 = vpop.permute.xlu1 %773 }
 0x673   :  { %v776_v9 = vmul.f32 %v774_v8, %v768_v7 }
 0x675   :  { %778 = vrot.lane.b32.xlu0 %v776_v9, %s1856_s0 }
 0x6e7   :  { %v779_v11 = vpop.permute.xlu0 %778 }
 0x6e8   :  { %v781_v12 = vadd.f32 %v779_v11, %v771_v10 }
 0x6ea   :  { %1811 = vtanh.f32 %v781_v12 }
 0x6eb   :  { %1813 = vtanh.f32 %v763_v42 }
 0x6f4   :  { %v1812_v38 = vpop.eup %1811 }
 0x6f5   :  { %784 = vrot.lane.b32.xlu1 %v1812_v38, %s1856_s0  ;;  %v1814_v13 = vpop.eup %1813 }
 0x6f6   :  { %v767_v14 = vmul.f32 0.5, %v1814_v13 }
 0x6f8   :  { %v769_v16 = vadd.f32 0.5, %v767_v14 }
 0x767   :  { %v785_v17 = vpop.permute.xlu1 %784 }
 0x768   :  { %v787_v18 = vmul.f32 %v785_v17, %v769_v16 }
 0x76a   :  { %1436 = vmatmul.mubr.msk.f32.vlgmr.msra.gmra.mrb[6].mxu0 %vm27_vm0, %v787_v18 }
 0x76b   :  { %1666 = vmatpush1.bf16.msra.mxu0 %v2072_v20  ;;  %967 = vmatprep.mubr.f32.mxu0 %v1855_v3 }
 0x76c   :  { %1668 = vmatprep.subr.bf16.mxu0 %v2088_v26 }
 0x76f   :  { %1670 = vmatpush1.bf16.msra.mxu0 %v2096_v29 }
 0x770   :  { %1672 = vmatprep.subr.bf16.mxu0 %v2124_v40 }
 0x773   :  { %1674 = vmatpush1.bf16.msra.mxu0 %v2126_v41 }
 0x774   :  { %1676 = vmatprep.subr.bf16.mxu0 %v2144_v49 }
 0x777   :  { %1678 = vmatpush1.bf16.msra.mxu0 %v2156_v53 }
 0x778   :  { %1680 = vmatprep.subr.bf16.mxu0 %v2061_v15 }
 0x83d   :  { %v862_v19 = vpop.f32.mrb[6].mxu0 }
 0x83e   :  { %v1752_v21 = vadd.f32 %v2473_v44, %v862_v19  ;;  %v864_v22 = vpop.f32.mrb[7].mxu0 }
 0x83f   :  { %v1754_v23 = vadd.f32 %v2475_v46, %v864_v22 }
 0x840   :  { %v869_v25 = vmul.f32 0.5, %v1752_v21 }
 0x841   :  { %1815 = vtanh.f32 %v1754_v23  ;;  %v870_v46 = vmul.f32 0.5, %v1754_v23 }
 0x842   :  { %1817 = vtanh.f32 %v869_v25 }
 0x84b   :  { %v1816_v24 = vpop.eup %1815 }
 0x84c   :  { %880 = vrot.lane.b32.xlu0 %v1816_v24, %s1856_s0  ;;  %v1818_v27 = vpop.eup %1817 }
 0x84d   :  { %v873_v28 = vmul.f32 0.5, %v1818_v27 }
 0x84f   :  { %v875_v30 = vadd.f32 0.5, %v873_v28 }
 0x851   :  { %v878_v33 = vmul.f32 %v875_v30, %v781_v12 }
 0x8be   :  { %v881_v31 = vpop.permute.xlu0 %880 }
 0x8bf   :  { %v883_v32 = vmul.f32 %v881_v31, %v875_v30 }
 0x8c1   :  { %885 = vrot.lane.b32.xlu1 %v883_v32, %s1856_s0 }
 0x933   :  { %v886_v35 = vpop.permute.xlu1 %885 }
 0x934   :  { %v888_v37 = vadd.f32 %v886_v35, %v878_v33 }
 0x936   :  { %1819 = vtanh.f32 %v888_v37 }
 0x937   :  { %1821 = vtanh.f32 %v870_v46 }
 0x940   :  { %v1820_v44 = vpop.eup %1819 }
 0x941   :  { %891 = vrot.lane.b32.xlu0 %v1820_v44, %s1856_s0  ;;  %v1822_v39 = vpop.eup %1821 }
 0x942   :  { %v874_v43 = vmul.f32 0.5, %v1822_v39 }
 0x944   :  { %v876_v45 = vadd.f32 0.5, %v874_v43 }
 0x9b3   :  { %v892_v34 = vpop.permute.xlu0 %891 }
 0x9b4   :  { %v894_v36 = vmul.f32 %v892_v34, %v876_v45 }
 0x9b6   :  { %1437 = vmatmul.mubr.msk.f32.vlgmr.msra.gmra.mrb[8].mxu0 %vm27_vm0, %v894_v36 }
 0x9b7   :  { %1682 = vmatpush1.bf16.msra.mxu0 %v2072_v20  ;;  %1074 = vmatprep.mubr.f32.mxu0 %v1855_v3 }
 0x9b8   :  { %1684 = vmatprep.subr.bf16.mxu0 %v2088_v26 }
 0x9bb   :  { %1686 = vmatpush1.bf16.msra.mxu0 %v2096_v29 }
 0x9bc   :  { %1688 = vmatprep.subr.bf16.mxu0 %v2124_v40 }
 0x9bf   :  { %1690 = vmatpush1.bf16.msra.mxu0 %v2126_v41 }
 0x9c0   :  { %1692 = vmatprep.subr.bf16.mxu0 %v2144_v49 }
 0x9c3   :  { %1694 = vmatpush1.bf16.msra.mxu0 %v2156_v53 }
 0x9c4   :  { %1696 = vmatprep.subr.bf16.mxu0 %v2061_v15 }
 0xa89   :  { %v969_v47 = vpop.f32.mrb[8].mxu0 }
 0xa8a   :  { %v1756_v48 = vadd.f32 %v2477_v50, %v969_v47  ;;  %v971_v51 = vpop.f32.mrb[9].mxu0 }
 0xa8b   :  { %v1758_v54 = vadd.f32 %v2480_v52, %v971_v51 }
 0xa8c   :  { %v976_v57 = vmul.f32 0.5, %v1756_v48 }
 0xa8d   :  { %1823 = vtanh.f32 %v1758_v54  ;;  %v977_v52 = vmul.f32 0.5, %v1758_v54 }
 0xa8e   :  { %1825 = vtanh.f32 %v976_v57 }
 0xa97   :  { %v1824_v55 = vpop.eup %1823 }
 0xa98   :  { %987 = vrot.lane.b32.xlu1 %v1824_v55, %s1856_s0  ;;  %v1826_v59 = vpop.eup %1825 }
 0xa99   :  { %v980_v61 = vmul.f32 0.5, %v1826_v59 }
 0xa9b   :  { %v982_v63 = vadd.f32 0.5, %v980_v61 }
 0xa9d   :  { %v985_v5 = vmul.f32 %v982_v63, %v888_v37 }
 0xb0a   :  { %v988_v1 = vpop.permute.xlu1 %987 }
 0xb0b   :  { %v990_v4 = vmul.f32 %v988_v1, %v982_v63 }
 0xb0d   :  { %992 = vrot.lane.b32.xlu0 %v990_v4, %s1856_s0 }
 0xb7f   :  { %v993_v6 = vpop.permute.xlu0 %992 }
 0xb80   :  { %v995_v7 = vadd.f32 %v993_v6, %v985_v5 }
 0xb82   :  { %1827 = vtanh.f32 %v995_v7 }
 0xb83   :  { %1829 = vtanh.f32 %v977_v52  ;;  %v1334_v52 = vld [vmem:[%s2631_s4 + $0x10] sm:$0xff] }
 0xb8c   :  { %v1828_v50 = vpop.eup %1827 }
 0xb8d   :  { %998 = vrot.lane.b32.xlu1 %v1828_v50, %s1856_s0  ;;  %v1830_v8 = vpop.eup %1829 }
 0xb8e   :  { %v981_v9 = vmul.f32 0.5, %v1830_v8  ;;  %v1335_v8 = vld [vmem:[%s2631_s4 + $0x18] sm:$0xff] }
 0xb90   :  { %v983_v10 = vadd.f32 0.5, %v981_v9  ;;  %v1731_v9 = vpack.c.bf16 %v1335_v8, %v1334_v52 }
 0xbff   :  { %v999_v11 = vpop.permute.xlu1 %998 }
 0xc00   :  { %v1001_v12 = vmul.f32 %v999_v11, %v983_v10  ;;  %v1336_v10 = vld [vmem:[%s2631_s4 + $0x20] sm:$0xff]  ;;  %v1337_v11 = vld [vmem:[%s2631_s4 + $0x28] sm:$0xff] }
 0xc02   :  { %1438 = vmatmul.mubr.msk.f32.vlgmr.msra.gmra.mrb[10].mxu0 %vm27_vm0, %v1001_v12  ;;  %v1734_v12 = vpack.c.bf16 %v1337_v11, %v1336_v10 }
 0xc03   :  { %1698 = vmatpush1.bf16.msra.mxu0 %v2072_v20  ;;  %1181 = vmatprep.mubr.f32.mxu0 %v1855_v3 }
 0xc04   :  { %1700 = vmatprep.subr.bf16.mxu0 %v2088_v26 }
 0xc07   :  { %1702 = vmatpush1.bf16.msra.mxu0 %v2096_v29 }
 0xc08   :  { %1704 = vmatprep.subr.bf16.mxu0 %v2124_v40 }
 0xc0b   :  { %1706 = vmatpush1.bf16.msra.mxu0 %v2126_v41 }
 0xc0c   :  { %1708 = vmatprep.subr.bf16.mxu0 %v2144_v49 }
 0xc0f   :  { %1710 = vmatpush1.bf16.msra.mxu0 %v2156_v53 }
 0xc10   :  { %1712 = vmatprep.subr.bf16.mxu0 %v2061_v15 }
 0xcd5   :  { %v1076_v38 = vpop.f32.mrb[10].mxu0 }
 0xcd6   :  { %v1760_v42 = vadd.f32 %v2482_v56, %v1076_v38  ;;  %v1078_v13 = vpop.f32.mrb[11].mxu0  ;;  %v1338_v38 = vld [vmem:[%s2631_s4 + $0x30] sm:$0xff] }
 0xcd7   :  { %v1762_v14 = vadd.f32 %v2485_v58, %v1078_v13 }
 0xcd8   :  { %v1083_v17 = vmul.f32 0.5, %v1760_v42  ;;  %v1339_v42 = vld [vmem:[%s2631_s4 + $0x38] sm:$0xff] }
 0xcd9   :  { %1831 = vtanh.f32 %v1762_v14  ;;  %v1084_v58 = vmul.f32 0.5, %v1762_v14  ;;  %v1737_v13 = vpack.c.bf16 %v1339_v42, %v1338_v38 }
 0xcda   :  { %1833 = vtanh.f32 %v1083_v17 }
 0xce3   :  { %v1832_v16 = vpop.eup %1831 }
 0xce4   :  { %1094 = vrot.lane.b32.xlu0 %v1832_v16, %s1856_s0  ;;  %v1834_v18 = vpop.eup %1833 }
 0xce5   :  { %v1087_v19 = vmul.f32 0.5, %v1834_v18 }
 0xce7   :  { %v1089_v21 = vadd.f32 0.5, %v1087_v19 }
 0xce9   :  { %v1092_v15 = vmul.f32 %v1089_v21, %v995_v7  ;;  %v1857_v7 = vmov 0.0|0.0  }
 0xd56   :  { %v1095_v22 = vpop.permute.xlu0 %1094 }
 0xd57   :  { %v1097_v23 = vmul.f32 %v1095_v22, %v1089_v21 }
 0xd59   :  { %1099 = vrot.lane.b32.xlu1 %v1097_v23, %s1856_s0 }
 0xdcb   :  { %v1100_v24 = vpop.permute.xlu1 %1099 }
 0xdcc   :  { %v1102_v25 = vadd.f32 %v1100_v24, %v1092_v15 }
 0xdce   :  { %1835 = vtanh.f32 %v1102_v25 }
 0xdcf   :  { %1837 = vtanh.f32 %v1084_v58 }
 0xdd8   :  { %v1836_v56 = vpop.eup %1835 }
 0xdd9   :  { %1105 = vrot.lane.b32.xlu0 %v1836_v56, %s1856_s0  ;;  %v1838_v27 = vpop.eup %1837 }
 0xdda   :  { %v1088_v28 = vmul.f32 0.5, %v1838_v27 }
 0xddc   :  { %v1090_v30 = vadd.f32 0.5, %v1088_v28 }
 0xe4b   :  { %v1106_v31 = vpop.permute.xlu0 %1105 }
 0xe4c   :  { %v1108_v32 = vmul.f32 %v1106_v31, %v1090_v30 }
 0xe4e   :  { %1439 = vmatmul.mubr.msk.f32.vlgmr.msra.gmra.mrb[12].mxu0 %vm27_vm0, %v1108_v32 }
 0xe4f   :  { %1714 = vmatpush1.bf16.msra.mxu0 %v2072_v20  ;;  %1288 = vmatprep.mubr.f32.mxu0 %v1855_v3 }
 0xe50   :  { %1716 = vmatprep.subr.bf16.mxu0 %v2088_v26 }
 0xe53   :  { %1718 = vmatpush1.bf16.msra.mxu0 %v2096_v29 }
 0xe54   :  { %1720 = vmatprep.subr.bf16.mxu0 %v2124_v40 }
 0xe57   :  { %1722 = vmatpush1.bf16.msra.mxu0 %v2126_v41 }
 0xe58   :  { %1724 = vmatprep.subr.bf16.mxu0 %v2144_v49 }
 0xe5b   :  { %1726 = vmatpush1.bf16.msra.mxu0 %v2156_v53 }
 0xe5c   :  { %1727 = vmatprep.subr.bf16.mxu0 %v1857_v7 }
 0xf21   :  { %v1183_v33 = vpop.f32.mrb[12].mxu0 }
 0xf22   :  { %v1764_v35 = vadd.f32 %v2487_v60, %v1183_v33  ;;  %v1185_v37 = vpop.f32.mrb[13].mxu0 }
 0xf23   :  { %v1766_v20 = vadd.f32 %v2489_v62, %v1185_v37 }
 0xf24   :  { %v1190_v26 = vmul.f32 0.5, %v1764_v35 }
 0xf25   :  { %1839 = vtanh.f32 %v1766_v20  ;;  %v1191_v62 = vmul.f32 0.5, %v1766_v20 }
 0xf26   :  { %1841 = vtanh.f32 %v1190_v26 }
 0xf2f   :  { %v1840_v44 = vpop.eup %1839 }
 0xf30   :  { %1201 = vrot.lane.b32.xlu1 %v1840_v44, %s1856_s0  ;;  %v1842_v29 = vpop.eup %1841 }
 0xf31   :  { %v1194_v40 = vmul.f32 0.5, %v1842_v29 }
 0xf33   :  { %v1196_v46 = vadd.f32 0.5, %v1194_v40 }
 0xf35   :  { %v1199_v49 = vmul.f32 %v1196_v46, %v1102_v25 }
 0xfa2   :  { %v1202_v41 = vpop.permute.xlu1 %1201 }
 0xfa3   :  { %v1204_v39 = vmul.f32 %v1202_v41, %v1196_v46 }
 0xfa5   :  { %1206 = vrot.lane.b32.xlu0 %v1204_v39, %s1856_s0 }
0x1017   :  { %v1207_v53 = vpop.permute.xlu0 %1206 }
0x1018   :  { %v1209_v43 = vadd.f32 %v1207_v53, %v1199_v49 }
0x101a   :  { %1843 = vtanh.f32 %v1209_v43 }
0x101b   :  { %1845 = vtanh.f32 %v1191_v62 }
0x1024   :  { %v1844_v60 = vpop.eup %1843 }
0x1025   :  { %1212 = vrot.lane.b32.xlu1 %v1844_v60, %s1856_s0  ;;  %v1846_v45 = vpop.eup %1845 }
0x1026   :  { %v1195_v34 = vmul.f32 0.5, %v1846_v45 }
0x1028   :  { %v1197_v36 = vadd.f32 0.5, %v1195_v34 }
0x1097   :  { %v1213_v47 = vpop.permute.xlu1 %1212 }
0x1098   :  { %v1215_v48 = vmul.f32 %v1213_v47, %v1197_v36 }
0x109a   :  { %1440 = vmatmul.mubr.msk.f32.vlgmr.msra.gmra.mrb[14].mxu0 %vm27_vm0, %v1215_v48 }
0x109b   :  { %1468 = vmatprep.mubr.msk.f32.mxu0 %vm1858_vm1, %v1855_v3  ;;  %v1441_v3 = vld [vmem:[%s2632_s5] ss:$0 sm:$0xff] }
0x116d   :  { %v1290_v51 = vpop.f32.mrb[14].mxu0 }
0x116e   :  { %v1768_v54 = vadd.f32 %v2491_v0, %v1290_v51  ;;  %v1292_v55 = vpop.f32.mrb[15].mxu0  ;;  %v1332_v0 = vld [vmem:[%s2631_s4] sm:$0xff] }
0x116f   :  { %v1770_v57 = vadd.f32 %v2493_v2, %v1292_v55  ;;  %v1333_v2 = vld [vmem:[%s2631_s4 + $0x8] sm:$0xff] }
0x1170   :  { %v1297_v61 = vmul.f32 0.5, %v1768_v54  ;;  %v1728_v50 = vpack.c.bf16 %v1333_v2, %v1332_v0 }
0x1171   :  { %1847 = vtanh.f32 %v1770_v57  ;;  %v1298_v19 = vmul.f32 0.5, %v1770_v57 }
0x1172   :  { %1849 = vtanh.f32 %v1297_v61  ;;  %1729 = vmatpush3.bf16.msra.mxu0 %v1728_v50 }
0x1173   :  { %1730 = vmatprep.subr.bf16.mxu0 %v1857_v7 }
0x1176   :  { %1732 = vmatpush3.bf16.msra.mxu0 %v1731_v9 }
0x1177   :  { %1733 = vmatprep.subr.bf16.mxu0 %v1857_v7 }
0x117a   :  { %1735 = vmatpush3.bf16.msra.mxu0 %v1734_v12 }
0x117b   :  { %v1848_v59 = vpop.eup %1847  ;;  %1736 = vmatprep.subr.bf16.mxu0 %v1857_v7 }
0x117c   :  { %1308 = vrot.lane.b32.xlu0 %v1848_v59, %s1856_s0  ;;  %v1850_v63 = vpop.eup %1849 }
0x117d   :  { %v1301_v1 = vmul.f32 0.5, %v1850_v63 }
0x117e   :  { %1738 = vmatpush3.bf16.msra.mxu0 %v1737_v13 }
0x117f   :  { %v1303_v4 = vadd.f32 0.5, %v1301_v1 }
0x1181   :  { %v1306_v14 = vmul.f32 %v1303_v4, %v1209_v43 }
0x11ee   :  { %v1309_v5 = vpop.permute.xlu0 %1308 }
0x11ef   :  { %v1311_v6 = vmul.f32 %v1309_v5, %v1303_v4 }
0x11f1   :  { %1313 = vrot.lane.b32.xlu1 %v1311_v6, %s1856_s0 }
0x1263   :  { %v1314_v16 = vpop.permute.xlu1 %1313 }
0x1264   :  { %v1316_v17 = vadd.f32 %v1314_v16, %v1306_v14 }
0x1266   :  { %1851 = vtanh.f32 %v1316_v17  ;;  %1325 = vrot.lane.b32.xlu1 %v1316_v17, %s1856_s0 }
0x1267   :  { %1853 = vtanh.f32 %v1298_v19 }
0x1270   :  { %v1852_v18 = vpop.eup %1851 }
0x1271   :  { %1319 = vrot.lane.b32.xlu0 %v1852_v18, %s1856_s0  ;;  %v1854_v22 = vpop.eup %1853 }
0x1272   :  { %v1302_v23 = vmul.f32 0.5, %v1854_v22 }
0x1274   :  { %v1304_v15 = vadd.f32 0.5, %v1302_v23 }
0x12d8   :  { %v1326_v21 = vpop.permute.xlu1 %1325 }
0x12d9   :  { %1328 = vst.msk [vmem:[#allocation4] sm:$0xff] %vm27_vm0, %v1326_v21 }
0x12e3   :  { %v1320_v24 = vpop.permute.xlu0 %1319 }
0x12e4   :  { %v1322_v25 = vmul.f32 %v1320_v24, %v1304_v15 }
0x12e6   :  { %1323 = vst.msk [vmem:[#allocation3] sm:$0xff] %vm27_vm0, %v1322_v25  ;;  %1469 = vmatmul.mubr.msk.f32.vlgmr.msra.gmra.mrb[16].mxu0 %vm27_vm0, %v1322_v25 }
0x13b9   :  { %v1416_v56 = vpop.f32.mrb[16].mxu0 }
0x13ba   :  { %v1417_v58 = vadd.f32 %v1441_v3, %v1416_v56  ;;  %v1470_v27 = vpop.f32.mrb[17].mxu0 }
0x13bc   :  { %1421 = vst.msk [vmem:[%s2633_s6] sm:$0xff] %vm1420_vm2, %v1417_v58 }

</bundles_post_ra>
